<compile_context>
chip_gen: v6e
topology: v6e:2x2x1
jax: 0.10.0
libtpu: 0.0.40
codegen_flags: <defaults>
</compile_context>

<pallas_src>
import functools

import jax
import jax.numpy as jnp
from jax.experimental import pallas as pl
from jax.experimental.pallas import tpu as pltpu

LANE = 128      # lane width     (last dim)
SUBLANE = 8     # sublane width  (second-to-last dim)


def _round_up(x, m):
    return (x + m - 1) // m * m


def _pad2(x, rows, cols):
    r, c = x.shape
    return jnp.pad(x, ((0, rows - r), (0, cols - c)))


# ---------------------------------------------------------------------------
# Fused kernel: vtx_lin -> n_layers x HyperMod -> cls, everything in VMEM.
# Operands: v, e activations + ONE weight slab + ONE graph-operator slab.
# ---------------------------------------------------------------------------
def _fused_forward_kernel(v_ref, e_ref, w_ref, g_ref,
                          v_out_ref, e_out_ref, pred_ref,
                          *, n_layers, edge_linear,
                          nv_p, ne_p, din_p, h_p, cls_p):
    f32 = jnp.float32

    # ---- graph operators (scalings folded & pre-broadcast at build time) ----
    r = 0
    ae = g_ref[r:r + ne_p, 0:nv_p]            # diag(1/e_reg_sum) @ A_e @ diag(v_weight)
    r += ne_p
    av = g_ref[r:r + nv_p, 0:ne_p]            # diag(1/v_reg_sum) @ A_v @ diag(e_weight)
    r += nv_p
    inv_ers = g_ref[r:r + ne_p, 0:h_p]        # 1/e_reg_sum, broadcast to h_p lanes
    r += ne_p
    v_scale = g_ref[r:r + nv_p, 0:h_p]        # v_weight*v_fac/v_reg_sum, broadcast

    # ---- vtx_lin ----
    r = 0
    vtx_w = w_ref[r:r + din_p, 0:h_p]
    r += din_p
    vtx_b = w_ref[r:r + 1, 0:h_p]
    r += SUBLANE
    v = jnp.dot(v_ref[...], vtx_w, preferred_element_type=f32) + vtx_b
    e = e_ref[...]

    # ---- static unrolled layer loop; per-layer weights sliced from the slab ----
    for _ in range(n_layers):
        w_v2e = w_ref[r:r + h_p, 0:h_p]
        r += h_p
        w_e2v = w_ref[r:r + h_p, 0:h_p]
        r += h_p
        b_v = w_ref[r:r + 1, 0:h_p]
        r += SUBLANE
        b_e = w_ref[r:r + 1, 0:h_p]
        r += SUBLANE

        ve = jnp.dot(v, w_v2e, preferred_element_type=f32) + b_v
        if not edge_linear:
            ve = jnp.maximum(ve, 0.0)
        # e = (e + A_e @ (ve*v_weight) * v_reg_weight) / e_reg_sum  (pre-folded)
        e = e * inv_ers + jnp.dot(ae, ve, preferred_element_type=f32)
        ev = jnp.maximum(jnp.dot(e, w_e2v, preferred_element_type=f32) + b_e, 0.0)
        # v = (v*v_weight*v_fac + A_v @ (ev*e_weight) * e_reg_weight) / v_reg_sum
        v = v * v_scale + jnp.dot(av, ev, preferred_element_type=f32)
        # dropout_p == 0.0 -> identity

    # ---- cls head ----
    cls_w = w_ref[r:r + h_p, 0:cls_p]
    r += h_p
    cls_b = w_ref[r:r + 1, 0:cls_p]

    v_out_ref[...] = v
    e_out_ref[...] = e
    pred_ref[...] = jnp.dot(v, cls_w, preferred_element_type=f32) + cls_b


# ---------------------------------------------------------------------------
# One-time build: fold graph scalings, pad & pack parameters into two slabs.
# Runs ONCE at graph/param build time, never on the per-forward path.
# ---------------------------------------------------------------------------
def build_hypergraph_operands(params, graph, *, n_layers, v_fac=1.0):
    f32 = jnp.float32
    input_dim, n_hidden = params["vtx_lin_w"].shape
    n_cls = params["cls_w"].shape[1]
    nv = graph["v_weight"].shape[0]
    ne = graph["e_weight"].shape[0]

    # Full 128-alignment of every axis: all in-kernel slices are tile-aligned,
    # all stores are lane-dense, zero padding keeps results exact.
    din_p = _round_up(input_dim, LANE)
    h_p = _round_up(n_hidden, LANE)
    cls_p = _round_up(n_cls, LANE)
    nv_p = _round_up(nv, LANE)
    ne_p = _round_up(ne, LANE)
    w_lane = max(h_p, cls_p)
    g_lane = max(nv_p, ne_p, h_p)

    # ---- weight slab: [vtx_w; vtx_b; (W_v2e; W_e2v; b_v; b_e) x L; cls_w; cls_b]
    blocks = [
        _pad2(params["vtx_lin_w"].astype(f32), din_p, w_lane),
        _pad2(params["vtx_lin_b"].reshape(1, -1).astype(f32), SUBLANE, w_lane),
    ]
    for lp in params["layers"]:
        blocks += [
            _pad2(lp["W_v2e"].astype(f32), h_p, w_lane),
            _pad2(lp["W_e2v"].astype(f32), h_p, w_lane),
            _pad2(lp["b_v"].reshape(1, -1).astype(f32), SUBLANE, w_lane),
            _pad2(lp["b_e"].reshape(1, -1).astype(f32), SUBLANE, w_lane),
        ]
    blocks += [
        _pad2(params["cls_w"].astype(f32), h_p, w_lane),
        _pad2(params["cls_b"].reshape(1, -1).astype(f32), SUBLANE, w_lane),
    ]
    w_slab = jnp.concatenate(blocks, axis=0)

    # ---- graph slab: exact folding of all graph-constant scalings ----
    a_e = graph["A_e"] * graph["v_weight"][:, 0][None, :] / graph["e_reg_sum"]
    a_v = graph["A_v"] * graph["e_weight"][:, 0][None, :] / graph["v_reg_sum"]
    inv_ers = jnp.broadcast_to(1.0 / graph["e_reg_sum"], (ne, n_hidden))
    v_scale = jnp.broadcast_to(graph["v_weight"] * v_fac / graph["v_reg_sum"],
                               (nv, n_hidden))
    g_slab = jnp.concatenate([
        _pad2(a_e.astype(f32), ne_p, g_lane),
        _pad2(a_v.astype(f32), nv_p, g_lane),
        _pad2(inv_ers.astype(f32), ne_p, g_lane),
        _pad2(v_scale.astype(f32), nv_p, g_lane),
    ], axis=0)

    dims = dict(nv=nv, ne=ne, input_dim=input_dim, n_hidden=n_hidden,
                n_cls=n_cls, nv_p=nv_p, ne_p=ne_p, din_p=din_p, h_p=h_p,
                cls_p=cls_p)
    return w_slab, g_slab, dims


# ---------------------------------------------------------------------------
# Forward factory: packs once, returns a jitted per-call forward that does
# only two pads + one pallas_call + three slices.
# ---------------------------------------------------------------------------
def make_hypergraph_forward(params, graph, *, n_layers, edge_linear=False,
                            v_fac=1.0):
    w_slab, g_slab, d = build_hypergraph_operands(
        params, graph, n_layers=n_layers, v_fac=v_fac)
    nv, ne = d["nv"], d["ne"]
    n_hidden, n_cls = d["n_hidden"], d["n_cls"]
    nv_p, ne_p = d["nv_p"], d["ne_p"]
    din_p, h_p, cls_p = d["din_p"], d["h_p"], d["cls_p"]

    kernel = functools.partial(
        _fused_forward_kernel, n_layers=n_layers, edge_linear=edge_linear,
        nv_p=nv_p, ne_p=ne_p, din_p=din_p, h_p=h_p, cls_p=cls_p)

    vmem = pl.BlockSpec(memory_space=pltpu.MemorySpace.VMEM)
    fused = pl.pallas_call(
        kernel,
        out_shape=(jax.ShapeDtypeStruct((nv_p, h_p), jnp.float32),
                   jax.ShapeDtypeStruct((ne_p, h_p), jnp.float32),
                   jax.ShapeDtypeStruct((nv_p, cls_p), jnp.float32)),
        in_specs=[vmem] * 4,
        out_specs=(vmem, vmem, vmem),
        compiler_params=pltpu.CompilerParams(
            vmem_limit_bytes=32 * 1024 * 1024),
    )

    @jax.jit
    def _forward(v, e, w_slab, g_slab):
        v_p = _pad2(v.astype(jnp.float32), nv_p, din_p)
        e_p = _pad2(e.astype(jnp.float32), ne_p, h_p)
        v_out_p, e_out_p, pred_p = fused(v_p, e_p, w_slab, g_slab)
        return (v_out_p[:nv, :n_hidden],
                e_out_p[:ne, :n_hidden],
                pred_p[:nv, :n_cls])

    return lambda v, e: _forward(v, e, w_slab, g_slab)


# ---------------------------------------------------------------------------
# Pure-JAX reference using the literal gather / scatter_add semantics
# ---------------------------------------------------------------------------
def reference_forward(v, e, params, raw, *, n_layers, edge_linear=False,
                      v_fac=1.0):
    pa0, pa1 = raw["pa0"], raw["pa1"]
    vw, ew = raw["v_weight"], raw["e_weight"]
    vrw, erw = raw["v_reg_weight"], raw["e_reg_weight"]
    ers, vrs = raw["e_reg_sum"], raw["v_reg_sum"]

    v = v @ params["vtx_lin_w"] + params["vtx_lin_b"]
    for i in range(n_layers):
        lp = params["layers"][i]
        ve = v @ lp["W_v2e"] + lp["b_v"]
        if not edge_linear:
            ve = jax.nn.relu(ve)
        v2 = v * vw * v_fac                        # v_fac = 1 (predict_edge=False)
        ve_sel = (ve * vw)[pa0] * vrw
        e = e.at[pa1].add(ve_sel) / ers            # eidx == paper_author[:, 1]
        ev = jax.nn.relu(e @ lp["W_e2v"] + lp["b_e"])
        ev_sel = (ev * ew)[pa1] * erw
        v = v2.at[pa0].add(ev_sel) / vrs           # vidx == paper_author[:, 0]
    pred = v @ params["cls_w"] + params["cls_b"]
    return v, e, pred


# ---------------------------------------------------------------------------
if __name__ == "__main__":
    key = jax.random.PRNGKey(0)
    ks = jax.random.split(key, 16)

    # problem sizes
    input_dim, n_hidden, n_cls = 16, 32, 4
    nv, ne, n_pairs, n_layers = 32, 24, 64, 2

    # ---- hypergraph structure (deterministic) ----
    pa0 = jax.random.randint(ks[0], (n_pairs,), 0, nv)   # vertex idx per pair
    pa1 = jax.random.randint(ks[1], (n_pairs,), 0, ne)   # edge idx per pair
    v_weight = jax.random.uniform(ks[2], (nv, 1), minval=0.2, maxval=1.0)
    e_weight = jax.random.uniform(ks[3], (ne, 1), minval=0.2, maxval=1.0)
    v_reg_weight = jax.random.uniform(ks[4], (n_pairs, 1), minval=0.2, maxval=1.0)
    e_reg_weight = jax.random.uniform(ks[5], (n_pairs, 1), minval=0.2, maxval=1.0)
    e_reg_sum = jax.random.uniform(ks[6], (ne, 1), minval=1.0, maxval=2.0)
    v_reg_sum = jax.random.uniform(ks[7], (nv, 1), minval=1.0, maxval=2.0)

    # dense weighted incidence matrices (exactly reproduce the scatter_add)
    A_e = jnp.zeros((ne, nv), jnp.float32).at[pa1, pa0].add(v_reg_weight[:, 0])
    A_v = jnp.zeros((nv, ne), jnp.float32).at[pa0, pa1].add(e_reg_weight[:, 0])

    graph = dict(v_weight=v_weight, e_weight=e_weight, A_e=A_e, A_v=A_v,
                 e_reg_sum=e_reg_sum, v_reg_sum=v_reg_sum)
    raw = dict(pa0=pa0, pa1=pa1, v_weight=v_weight, e_weight=e_weight,
               v_reg_weight=v_reg_weight, e_reg_weight=e_reg_weight,
               e_reg_sum=e_reg_sum, v_reg_sum=v_reg_sum)

    # ---- parameters (deterministic init) ----
    layers = []
    for i in range(n_layers):
        kk = jax.random.split(ks[8 + i], 2)
        layers.append(dict(
            W_v2e=jax.random.normal(kk[0], (n_hidden, n_hidden)) * 0.1,
            W_e2v=jax.random.normal(kk[1], (n_hidden, n_hidden)) * 0.1,
            b_v=jnp.zeros((n_hidden,), jnp.float32),
            b_e=jnp.zeros((n_hidden,), jnp.float32),
        ))
    params = dict(
        vtx_lin_w=jax.random.normal(ks[10], (input_dim, n_hidden)) * 0.1,
        vtx_lin_b=jnp.zeros((n_hidden,), jnp.float32),
        cls_w=jax.random.normal(ks[11], (n_hidden, n_cls)) * 0.1,
        cls_b=jnp.zeros((n_cls,), jnp.float32),
        layers=layers,
    )

    # ---- inputs ----
    v_in = jax.random.normal(ks[12], (nv, input_dim), jnp.float32)
    e_in = jax.random.normal(ks[13], (ne, n_hidden), jnp.float32)

    # ---- build once (padding / folding hoisted out of the forward path) ----
    forward = make_hypergraph_forward(params, graph, n_layers=n_layers,
                                      edge_linear=False, v_fac=1.0)

    # ---- run fused Pallas implementation ----
    v_out, e_out, pred = forward(v_in, e_in)
    jax.block_until_ready((v_out, e_out, pred))

    # ---- verify against literal gather/scatter reference ----
    v_ref, e_ref, pred_ref = reference_forward(v_in, e_in, params, raw,
                                               n_layers=n_layers,
                                               edge_linear=False, v_fac=1.0)
    assert jnp.allclose(v_out, v_ref, atol=1e-4, rtol=1e-4)
    assert jnp.allclose(e_out, e_ref, atol=1e-4, rtol=1e-4)
    assert jnp.allclose(pred, pred_ref, atol=1e-4, rtol=1e-4)

    print("KERNEL_OK")
</pallas_src>

<mosaic_0001>
module attributes {stable_mosaic.version = 11 : i64} {
  func.func @_fused_forward_kernel(%arg0: memref<128x128xf32, #tpu.memory_space<vmem>>, %arg1: memref<128x128xf32, #tpu.memory_space<vmem>>, %arg2: memref<816x128xf32, #tpu.memory_space<vmem>>, %arg3: memref<512x128xf32, #tpu.memory_space<vmem>>, %arg4: memref<128x128xf32, #tpu.memory_space<vmem>>, %arg5: memref<128x128xf32, #tpu.memory_space<vmem>>, %arg6: memref<128x128xf32, #tpu.memory_space<vmem>>) attributes {dimension_semantics = [], scalar_prefetch = 0 : i64, scratch_operands = 0 : i64, tpu.core_type = #tpu.core_type<tc>} {
    %c0 = arith.constant 0 : index
    %c0_0 = arith.constant 0 : index
    %0 = vector.load %arg3[%c0, %c0_0] : memref<512x128xf32, #tpu.memory_space<vmem>>, vector<128x128xf32>
    %c128 = arith.constant 128 : index
    %c0_1 = arith.constant 0 : index
    %1 = vector.load %arg3[%c128, %c0_1] : memref<512x128xf32, #tpu.memory_space<vmem>>, vector<128x128xf32>
    %c256 = arith.constant 256 : index
    %c0_2 = arith.constant 0 : index
    %2 = vector.load %arg3[%c256, %c0_2] : memref<512x128xf32, #tpu.memory_space<vmem>>, vector<128x128xf32>
    %c384 = arith.constant 384 : index
    %c0_3 = arith.constant 0 : index
    %3 = vector.load %arg3[%c384, %c0_3] : memref<512x128xf32, #tpu.memory_space<vmem>>, vector<128x128xf32>
    %c0_4 = arith.constant 0 : index
    %c0_5 = arith.constant 0 : index
    %4 = vector.load %arg2[%c0_4, %c0_5] : memref<816x128xf32, #tpu.memory_space<vmem>>, vector<128x128xf32>
    %c128_6 = arith.constant 128 : index
    %c0_7 = arith.constant 0 : index
    %5 = vector.load %arg2[%c128_6, %c0_7] : memref<816x128xf32, #tpu.memory_space<vmem>>, vector<1x128xf32>
    %c0_8 = arith.constant 0 : index
    %c0_9 = arith.constant 0 : index
    %6 = vector.load %arg0[%c0_8, %c0_9] : memref<128x128xf32, #tpu.memory_space<vmem>>, vector<128x128xf32>
    %cst = arith.constant dense<0.000000e+00> : vector<128x128xf32>
    %7 = tpu.matmul %6, %4, %cst {dimension_numbers = #tpu.dot_dimension_numbers<[1], [0], [0], [1], [0, 0, 1, 1], [], []>} : vector<128x128xf32>, vector<128x128xf32>, vector<128x128xf32> -> vector<128x128xf32>
    %8 = vector.broadcast %5 : vector<1x128xf32> to vector<128x128xf32>
    %9 = arith.addf %7, %8 : vector<128x128xf32>
    %c0_10 = arith.constant 0 : index
    %c0_11 = arith.constant 0 : index
    %10 = vector.load %arg1[%c0_10, %c0_11] : memref<128x128xf32, #tpu.memory_space<vmem>>, vector<128x128xf32>
    %c136 = arith.constant 136 : index
    %c0_12 = arith.constant 0 : index
    %11 = vector.load %arg2[%c136, %c0_12] : memref<816x128xf32, #tpu.memory_space<vmem>>, vector<128x128xf32>
    %c264 = arith.constant 264 : index
    %c0_13 = arith.constant 0 : index
    %12 = vector.load %arg2[%c264, %c0_13] : memref<816x128xf32, #tpu.memory_space<vmem>>, vector<128x128xf32>
    %c392 = arith.constant 392 : index
    %c0_14 = arith.constant 0 : index
    %13 = vector.load %arg2[%c392, %c0_14] : memref<816x128xf32, #tpu.memory_space<vmem>>, vector<1x128xf32>
    %c400 = arith.constant 400 : index
    %c0_15 = arith.constant 0 : index
    %14 = vector.load %arg2[%c400, %c0_15] : memref<816x128xf32, #tpu.memory_space<vmem>>, vector<1x128xf32>
    %cst_16 = arith.constant dense<0.000000e+00> : vector<128x128xf32>
    %15 = tpu.matmul %9, %11, %cst_16 {dimension_numbers = #tpu.dot_dimension_numbers<[1], [0], [0], [1], [0, 0, 1, 1], [], []>} : vector<128x128xf32>, vector<128x128xf32>, vector<128x128xf32> -> vector<128x128xf32>
    %16 = vector.broadcast %13 : vector<1x128xf32> to vector<128x128xf32>
    %17 = arith.addf %15, %16 : vector<128x128xf32>
    %cst_17 = arith.constant 0.000000e+00 : f32
    %18 = vector.broadcast %cst_17 : f32 to vector<128x128xf32>
    %19 = arith.maximumf %17, %18 : vector<128x128xf32>
    %20 = arith.mulf %10, %2 : vector<128x128xf32>
    %cst_18 = arith.constant dense<0.000000e+00> : vector<128x128xf32>
    %21 = tpu.matmul %0, %19, %cst_18 {dimension_numbers = #tpu.dot_dimension_numbers<[1], [0], [0], [1], [0, 0, 1, 1], [], []>} : vector<128x128xf32>, vector<128x128xf32>, vector<128x128xf32> -> vector<128x128xf32>
    %22 = arith.addf %20, %21 : vector<128x128xf32>
    %cst_19 = arith.constant dense<0.000000e+00> : vector<128x128xf32>
    %23 = tpu.matmul %22, %12, %cst_19 {dimension_numbers = #tpu.dot_dimension_numbers<[1], [0], [0], [1], [0, 0, 1, 1], [], []>} : vector<128x128xf32>, vector<128x128xf32>, vector<128x128xf32> -> vector<128x128xf32>
    %24 = vector.broadcast %14 : vector<1x128xf32> to vector<128x128xf32>
    %25 = arith.addf %23, %24 : vector<128x128xf32>
    %cst_20 = arith.constant 0.000000e+00 : f32
    %26 = vector.broadcast %cst_20 : f32 to vector<128x128xf32>
    %27 = arith.maximumf %25, %26 : vector<128x128xf32>
    %28 = arith.mulf %9, %3 : vector<128x128xf32>
    %cst_21 = arith.constant dense<0.000000e+00> : vector<128x128xf32>
    %29 = tpu.matmul %1, %27, %cst_21 {dimension_numbers = #tpu.dot_dimension_numbers<[1], [0], [0], [1], [0, 0, 1, 1], [], []>} : vector<128x128xf32>, vector<128x128xf32>, vector<128x128xf32> -> vector<128x128xf32>
    %30 = arith.addf %28, %29 : vector<128x128xf32>
    %c408 = arith.constant 408 : index
    %c0_22 = arith.constant 0 : index
    %31 = vector.load %arg2[%c408, %c0_22] : memref<816x128xf32, #tpu.memory_space<vmem>>, vector<128x128xf32>
    %c536 = arith.constant 536 : index
    %c0_23 = arith.constant 0 : index
    %32 = vector.load %arg2[%c536, %c0_23] : memref<816x128xf32, #tpu.memory_space<vmem>>, vector<128x128xf32>
    %c664 = arith.constant 664 : index
    %c0_24 = arith.constant 0 : index
    %33 = vector.load %arg2[%c664, %c0_24] : memref<816x128xf32, #tpu.memory_space<vmem>>, vector<1x128xf32>
    %c672 = arith.constant 672 : index
    %c0_25 = arith.constant 0 : index
    %34 = vector.load %arg2[%c672, %c0_25] : memref<816x128xf32, #tpu.memory_space<vmem>>, vector<1x128xf32>
    %cst_26 = arith.constant dense<0.000000e+00> : vector<128x128xf32>
    %35 = tpu.matmul %30, %31, %cst_26 {dimension_numbers = #tpu.dot_dimension_numbers<[1], [0], [0], [1], [0, 0, 1, 1], [], []>} : vector<128x128xf32>, vector<128x128xf32>, vector<128x128xf32> -> vector<128x128xf32>
    %36 = vector.broadcast %33 : vector<1x128xf32> to vector<128x128xf32>
    %37 = arith.addf %35, %36 : vector<128x128xf32>
    %cst_27 = arith.constant 0.000000e+00 : f32
    %38 = vector.broadcast %cst_27 : f32 to vector<128x128xf32>
    %39 = arith.maximumf %37, %38 : vector<128x128xf32>
    %40 = arith.mulf %22, %2 : vector<128x128xf32>
    %cst_28 = arith.constant dense<0.000000e+00> : vector<128x128xf32>
    %41 = tpu.matmul %0, %39, %cst_28 {dimension_numbers = #tpu.dot_dimension_numbers<[1], [0], [0], [1], [0, 0, 1, 1], [], []>} : vector<128x128xf32>, vector<128x128xf32>, vector<128x128xf32> -> vector<128x128xf32>
    %42 = arith.addf %40, %41 : vector<128x128xf32>
    %cst_29 = arith.constant dense<0.000000e+00> : vector<128x128xf32>
    %43 = tpu.matmul %42, %32, %cst_29 {dimension_numbers = #tpu.dot_dimension_numbers<[1], [0], [0], [1], [0, 0, 1, 1], [], []>} : vector<128x128xf32>, vector<128x128xf32>, vector<128x128xf32> -> vector<128x128xf32>
    %44 = vector.broadcast %34 : vector<1x128xf32> to vector<128x128xf32>
    %45 = arith.addf %43, %44 : vector<128x128xf32>
    %cst_30 = arith.constant 0.000000e+00 : f32
    %46 = vector.broadcast %cst_30 : f32 to vector<128x128xf32>
    %47 = arith.maximumf %45, %46 : vector<128x128xf32>
    %48 = arith.mulf %30, %3 : vector<128x128xf32>
    %cst_31 = arith.constant dense<0.000000e+00> : vector<128x128xf32>
    %49 = tpu.matmul %1, %47, %cst_31 {dimension_numbers = #tpu.dot_dimension_numbers<[1], [0], [0], [1], [0, 0, 1, 1], [], []>} : vector<128x128xf32>, vector<128x128xf32>, vector<128x128xf32> -> vector<128x128xf32>
    %50 = arith.addf %48, %49 : vector<128x128xf32>
    %c680 = arith.constant 680 : index
    %c0_32 = arith.constant 0 : index
    %51 = vector.load %arg2[%c680, %c0_32] : memref<816x128xf32, #tpu.memory_space<vmem>>, vector<128x128xf32>
    %c808 = arith.constant 808 : index
    %c0_33 = arith.constant 0 : index
    %52 = vector.load %arg2[%c808, %c0_33] : memref<816x128xf32, #tpu.memory_space<vmem>>, vector<1x128xf32>
    %c0_34 = arith.constant 0 : index
    %c0_35 = arith.constant 0 : index
    %53 = vector.load %arg4[%c0_34, %c0_35] : memref<128x128xf32, #tpu.memory_space<vmem>>, vector<128x128xf32>
    tpu.vector_store %arg4[%c0_34, %c0_35], %50 {strides = array<i32>} : memref<128x128xf32, #tpu.memory_space<vmem>>, vector<128x128xf32>,
    %c0_36 = arith.constant 0 : index
    %c0_37 = arith.constant 0 : index
    %54 = vector.load %arg5[%c0_36, %c0_37] : memref<128x128xf32, #tpu.memory_space<vmem>>, vector<128x128xf32>
    tpu.vector_store %arg5[%c0_36, %c0_37], %42 {strides = array<i32>} : memref<128x128xf32, #tpu.memory_space<vmem>>, vector<128x128xf32>,
    %cst_38 = arith.constant dense<0.000000e+00> : vector<128x128xf32>
    %55 = tpu.matmul %50, %51, %cst_38 {dimension_numbers = #tpu.dot_dimension_numbers<[1], [0], [0], [1], [0, 0, 1, 1], [], []>} : vector<128x128xf32>, vector<128x128xf32>, vector<128x128xf32> -> vector<128x128xf32>
    %56 = vector.broadcast %52 : vector<1x128xf32> to vector<128x128xf32>
    %57 = arith.addf %55, %56 : vector<128x128xf32>
    %c0_39 = arith.constant 0 : index
    %c0_40 = arith.constant 0 : index
    %58 = vector.load %arg6[%c0_39, %c0_40] : memref<128x128xf32, #tpu.memory_space<vmem>>, vector<128x128xf32>
    tpu.vector_store %arg6[%c0_39, %c0_40], %57 {strides = array<i32>} : memref<128x128xf32, #tpu.memory_space<vmem>>, vector<128x128xf32>,
    return
  }
}

</mosaic_0001>

<bundles_post_ra>
// kernel: _forward.1
= control target key start
LH: loop header
LB: loop body
LE: loop exit
PB: predicated region body
PF: predicated region fallthrough
CT: control target
= control target key end

     0   :  { %12 = vsyncpa [#allocation3], 0  ;;  %s3665_s0 = inlined_call_operand.vmem [shape: f32[128,128], index: 0, kind: input, shape index: {}]   ;;  %s3666_s1 = inlined_call_operand.vmem [shape: f32[128,128], index: 1, kind: input, shape index: {}]   ;;  %s3667_s2 = inlined_call_operand.hbm [shape: f32[816,128], index: 2, kind: input, shape index: {}]   ;;  %s3668_s3 = inlined_call_operand.hbm [shape: f32[512,128], index: 3, kind: input, shape index: {}]   ;;  %s3669_s4 = inlined_call_operand.vmem [shape: f32[128,128], index: 4, kind: output, shape index: {0}]   ;;  %s3670_s5 = inlined_call_operand.vmem [shape: f32[128,128], index: 5, kind: output, shape index: {1}]   ;;  %s3671_s6 = inlined_call_operand.vmem [shape: f32[128,128], index: 6, kind: output, shape index: {2}]  }
   0x1   :  { %13 = vsyncpa [#allocation5], 0  ;;  %s2908_s21 = smov [#allocation2]  }
   0x2   :  { %s23_s22 = sshll.u32 %s2908_s21, 4  ;;  %s24_s22 = int_to_ptr.vmem [resolvable:$true] %s23_s22 }
   0x3   :  { %s2872_s23 = scalar_lea.vmem %s24_s22, 13056  ;;  %p2877_p1 = scmp.lt.s32.totalorder %s24_s22, %s24_s22 }
   0x4   :  { %p2873_p0 = scmp.ne.s32.totalorder %s24_s22, %s2872_s23  ;;  %p2878_p2 = scmp.lt.s32.totalorder %s2872_s23, %s2872_s23 }
   0x6   :  { %p2879_p3 = por %p2878_p2, %p2877_p1 }
   0x8   :  { %p2880_p4 = pnand %p2879_p3, %p2873_p0 }
   0xa   :  { %2883 = shalt.err (!%p2880_p4)
}
   0xb   :  { %s2909_s24 = smov 128   ;;  %s2910_s25 = smov 8  }
   0xc   :  { %29 = dma.hbm_to_vmem [thread:$0]  %s3667_s2, 13056, %s24_s22, [#allocation3], %s2909_s24, %s2909_s24, %s2910_s25  }
   0xd   :  { %s2911_s28 = smov [#allocation4]  }
   0xe   :  { %s35_s29 = sshll.u32 %s2911_s28, 4  ;;  %s36_s29 = int_to_ptr.vmem [resolvable:$true] %s35_s29 }
   0xf   :  { %s2892_s30 = scalar_lea.vmem %s36_s29, 8192  ;;  %p2897_p6 = scmp.lt.s32.totalorder %s36_s29, %s36_s29 }
  0x10   :  { %p2893_p5 = scmp.ne.s32.totalorder %s36_s29, %s2892_s30  ;;  %p2898_p7 = scmp.lt.s32.totalorder %s2892_s30, %s2892_s30 }
  0x12   :  { %p2899_p8 = por %p2898_p7, %p2897_p6 }
  0x14   :  { %p2900_p9 = pnand %p2899_p8, %p2893_p5 }
  0x16   :  { %2903 = shalt.err (!%p2900_p9)
}
  0x17   :  { %41 = dma.hbm_to_vmem [thread:$0]  %s3668_s3, 8192, %s36_s29, [#allocation5], %s2909_s24, %s2909_s24, %s2910_s25  }
  0x18   :  { %2904 = dma.done.wait [#allocation3], 13056  }
  0x19   :  { %2905 = vsyncadd [#allocation3], 4294954240 }
  0x1a   :  { %2906 = dma.done.wait [#allocation5], 8192  }
  0x1b   :  { %2907 = vsyncadd [#allocation5], 4294959104  ;;  %v127_v0 = vld [vmem:[#allocation2 + $0x78] sm:$0xff]  ;;  %v126_v1 = vld [vmem:[#allocation2 + $0x70] sm:$0xff] }
  0x1c   :  { %2300 = vmatprep.subr.mxu0 %v127_v0  ;;  %v125_v2 = vld [vmem:[#allocation2 + $0x68] sm:$0xff]  ;;  %v124_v3 = vld [vmem:[#allocation2 + $0x60] sm:$0xff]  ;;  %v123_v5 = vld [vmem:[#allocation2 + $0x58] sm:$0xff] }
  0x1d   :  { %2301 = vmatpush3.msra.mxu0 %v127_v0  ;;  %v129_v4 = vld [vmem:[%s3665_s0] sm:$0xff]  ;;  %v122_v6 = vld [vmem:[#allocation2 + $0x50] sm:$0xff]  ;;  %v121_v7 = vld [vmem:[#allocation2 + $0x48] sm:$0xff] }
  0x1e   :  { %2302 = vmatprep.subr.mxu0 %v126_v1  ;;  %2332 = vmatprep.mubr.f32.mxu0 %v129_v4  ;;  %v325_v8 = vld [vmem:[#allocation2 + $0x100] sm:$0xff]  ;;  %v324_v9 = vld [vmem:[#allocation2 + $0xf8] sm:$0xff]  ;;  %v323_v11 = vld [vmem:[#allocation2 + $0xf0] sm:$0xff] }
  0x1f   :  { %2303 = vmatpush3.msra.mxu0 %v126_v1  ;;  %2356 = vmatprep.subr.mxu1 %v325_v8  ;;  %v120_v10 = vld [vmem:[#allocation2 + $0x40] sm:$0xff]  ;;  %v119_v12 = vld [vmem:[#allocation2 + $0x38] sm:$0xff]  ;;  %v322_v13 = vld [vmem:[#allocation2 + $0xe8] sm:$0xff] }
  0x20   :  { %2304 = vmatprep.subr.mxu0 %v125_v2  ;;  %2357 = vmatpush3.msra.mxu1 %v325_v8  ;;  %v118_v14 = vld [vmem:[#allocation2 + $0x30] sm:$0xff]  ;;  %v321_v15 = vld [vmem:[#allocation2 + $0xe0] sm:$0xff]  ;;  %v117_v16 = vld [vmem:[#allocation2 + $0x28] sm:$0xff] }
  0x21   :  { %2305 = vmatpush3.msra.mxu0 %v125_v2  ;;  %2358 = vmatprep.subr.mxu1 %v324_v9  ;;  %v320_v17 = vld [vmem:[#allocation2 + $0xd8] sm:$0xff]  ;;  %v116_v18 = vld [vmem:[#allocation2 + $0x20] sm:$0xff]  ;;  %v319_v19 = vld [vmem:[#allocation2 + $0xd0] sm:$0xff] }
  0x22   :  { %2306 = vmatprep.subr.mxu0 %v124_v3  ;;  %2359 = vmatpush3.msra.mxu1 %v324_v9  ;;  %v115_v20 = vld [vmem:[#allocation2 + $0x18] sm:$0xff]  ;;  %v318_v21 = vld [vmem:[#allocation2 + $0xc8] sm:$0xff]  ;;  %v114_v22 = vld [vmem:[#allocation2 + $0x10] sm:$0xff] }
  0x23   :  { %2307 = vmatpush3.msra.mxu0 %v124_v3  ;;  %2360 = vmatprep.subr.mxu1 %v323_v11  ;;  %v317_v23 = vld [vmem:[#allocation2 + $0xc0] sm:$0xff]  ;;  %v113_v24 = vld [vmem:[#allocation2 + $0x8] sm:$0xff]  ;;  %v316_v25 = vld [vmem:[#allocation2 + $0xb8] sm:$0xff] }
  0x24   :  { %2308 = vmatprep.subr.mxu0 %v123_v5  ;;  %2361 = vmatpush3.msra.mxu1 %v323_v11  ;;  %v112_v26 = vld [vmem:[#allocation2] sm:$0xff]  ;;  %v315_v27 = vld [vmem:[#allocation2 + $0xb0] sm:$0xff]  ;;  %v130_v28 = vld [vmem:[%s3665_s0 + $0x8] sm:$0xff] }
  0x25   :  { %2309 = vmatpush3.msra.mxu0 %v123_v5  ;;  %2362 = vmatprep.subr.mxu1 %v322_v13  ;;  %v314_v29 = vld [vmem:[#allocation2 + $0xa8] sm:$0xff]  ;;  %v131_v30 = vld [vmem:[%s3665_s0 + $0x10] sm:$0xff]  ;;  %v313_v31 = vld [vmem:[#allocation2 + $0xa0] sm:$0xff] }
  0x26   :  { %2310 = vmatprep.subr.mxu0 %v122_v6  ;;  %2363 = vmatpush3.msra.mxu1 %v322_v13  ;;  %v132_v32 = vld [vmem:[%s3665_s0 + $0x18] sm:$0xff]  ;;  %v133_v33 = vld [vmem:[%s3665_s0 + $0x20] sm:$0xff]  ;;  %v134_v34 = vld [vmem:[%s3665_s0 + $0x28] sm:$0xff] }
  0x27   :  { %2311 = vmatpush3.msra.mxu0 %v122_v6  ;;  %2364 = vmatprep.subr.mxu1 %v321_v15  ;;  %v135_v35 = vld [vmem:[%s3665_s0 + $0x30] sm:$0xff]  ;;  %v136_v36 = vld [vmem:[%s3665_s0 + $0x38] sm:$0xff]  ;;  %v137_v37 = vld [vmem:[%s3665_s0 + $0x40] sm:$0xff] }
  0x28   :  { %2312 = vmatprep.subr.mxu0 %v121_v7  ;;  %2365 = vmatpush3.msra.mxu1 %v321_v15  ;;  %v138_v38 = vld [vmem:[%s3665_s0 + $0x48] sm:$0xff]  ;;  %v139_v39 = vld [vmem:[%s3665_s0 + $0x50] sm:$0xff]  ;;  %v140_v40 = vld [vmem:[%s3665_s0 + $0x58] sm:$0xff] }
  0x29   :  { %2313 = vmatpush3.msra.mxu0 %v121_v7  ;;  %2366 = vmatprep.subr.mxu1 %v320_v17  ;;  %v141_v41 = vld [vmem:[%s3665_s0 + $0x60] sm:$0xff]  ;;  %v142_v42 = vld [vmem:[%s3665_s0 + $0x68] sm:$0xff]  ;;  %v143_v43 = vld [vmem:[%s3665_s0 + $0x70] sm:$0xff] }
  0x2a   :  { %2314 = vmatprep.subr.mxu0 %v120_v10  ;;  %2367 = vmatpush3.msra.mxu1 %v320_v17  ;;  %v144_v44 = vld [vmem:[%s3665_s0 + $0x78] sm:$0xff]  ;;  %v311_v46 = vld [vmem:[#allocation2 + $0x90] sm:$0xff]  ;;  %v310_v47 = vld [vmem:[#allocation2 + $0x88] sm:$0xff] }
  0x2b   :  { %2315 = vmatpush3.msra.mxu0 %v120_v10  ;;  %2368 = vmatprep.subr.mxu1 %v319_v19  ;;  %v312_v45 = vld [vmem:[#allocation2 + $0x98] sm:$0xff]  ;;  %v1974_v49 = vld [vmem:[#allocation2 + $0x80] ss:$0 sm:$0xff]  ;;  %v3049_v17 = vld [vmem:[#allocation4] sm:$0xff] }
  0x2c   :  { %2316 = vmatprep.subr.mxu0 %v119_v12  ;;  %2369 = vmatpush3.msra.mxu1 %v319_v19  ;;  %v340_v19 = vld [vmem:[#allocation2 + $0x178] sm:$0xff] }
  0x2d   :  { %2317 = vmatpush3.msra.mxu0 %v119_v12  ;;  %2370 = vmatprep.subr.mxu1 %v318_v21 }
  0x2e   :  { %2318 = vmatprep.subr.mxu0 %v118_v14  ;;  %2371 = vmatpush3.msra.mxu1 %v318_v21  ;;  %v338_v21 = vld [vmem:[#allocation2 + $0x168] sm:$0xff] }
  0x2f   :  { %2319 = vmatpush3.msra.mxu0 %v118_v14  ;;  %2372 = vmatprep.subr.mxu1 %v317_v23 }
  0x30   :  { %2320 = vmatprep.subr.mxu0 %v117_v16  ;;  %2373 = vmatpush3.msra.mxu1 %v317_v23  ;;  %v336_v23 = vld [vmem:[#allocation2 + $0x158] sm:$0xff] }
  0x31   :  { %2321 = vmatpush3.msra.mxu0 %v117_v16  ;;  %2374 = vmatprep.subr.mxu1 %v316_v25 }
  0x32   :  { %2322 = vmatprep.subr.mxu0 %v116_v18  ;;  %2375 = vmatpush3.msra.mxu1 %v316_v25  ;;  %v334_v25 = vld [vmem:[#allocation2 + $0x148] sm:$0xff] }
  0x33   :  { %2323 = vmatpush3.msra.mxu0 %v116_v18  ;;  %2376 = vmatprep.subr.mxu1 %v315_v27  ;;  %v341_v18 = vld [vmem:[#allocation2 + $0x180] sm:$0xff] }
  0x34   :  { %2324 = vmatprep.subr.mxu0 %v115_v20  ;;  %2377 = vmatpush3.msra.mxu1 %v315_v27  ;;  %v332_v27 = vld [vmem:[#allocation2 + $0x138] sm:$0xff] }
  0x35   :  { %2325 = vmatpush3.msra.mxu0 %v115_v20  ;;  %2378 = vmatprep.subr.mxu1 %v314_v29  ;;  %v339_v20 = vld [vmem:[#allocation2 + $0x170] sm:$0xff] }
  0x36   :  { %2326 = vmatprep.subr.mxu0 %v114_v22  ;;  %2379 = vmatpush3.msra.mxu1 %v314_v29  ;;  %v330_v29 = vld [vmem:[#allocation2 + $0x128] sm:$0xff] }
  0x37   :  { %2327 = vmatpush3.msra.mxu0 %v114_v22  ;;  %2380 = vmatprep.subr.mxu1 %v313_v31  ;;  %v337_v22 = vld [vmem:[#allocation2 + $0x160] sm:$0xff] }
  0x38   :  { %2328 = vmatprep.subr.mxu0 %v113_v24  ;;  %2381 = vmatpush3.msra.mxu1 %v313_v31 }
  0x39   :  { %2329 = vmatpush3.msra.mxu0 %v113_v24  ;;  %2382 = vmatprep.subr.mxu1 %v312_v45  ;;  %v335_v24 = vld [vmem:[#allocation2 + $0x150] sm:$0xff] }
  0x3a   :  { %2330 = vmatprep.subr.mxu0 %v112_v26  ;;  %2383 = vmatpush3.msra.mxu1 %v312_v45  ;;  %v1975_v45 = vld [vmem:[#allocation2 + $0x188] ss:$0 sm:$0xff] }
  0x3b   :  { %2331 = vmatpush3.msra.mxu0 %v112_v26  ;;  %2384 = vmatprep.subr.mxu1 %v311_v46  ;;  %v333_v26 = vld [vmem:[#allocation2 + $0x140] sm:$0xff] }
  0x3c   :  { %2333 = vmatmul.mubr.f32.vlgmr.msra.gmra.mxu0 %v130_v28  ;;  %2385 = vmatpush3.msra.mxu1 %v311_v46  ;;  %v331_v28 = vld [vmem:[#allocation2 + $0x130] sm:$0xff] }
  0x3d   :  { %2335 = vmatprep.mubr.f32.mxu0 %v131_v30  ;;  %2386 = vmatprep.subr.mxu1 %v310_v47  ;;  %v329_v30 = vld [vmem:[#allocation2 + $0x120] sm:$0xff] }
  0x3e   :  { %2387 = vmatpush3.msra.mxu1 %v310_v47 }
  0x3f   :  { %2468 = vmatprep.subr.mxu1 %v341_v18 }
  0x40   :  { %2336 = vmatmul.mubr.f32.gmra.mxu0 %v132_v32 }
  0x41   :  { %2338 = vmatprep.mubr.f32.mxu0 %v133_v33 }
  0x44   :  { %2339 = vmatmul.mubr.f32.gmra.mxu0 %v134_v34 }
  0x45   :  { %2341 = vmatprep.mubr.f32.mxu0 %v135_v35 }
  0x48   :  { %2342 = vmatmul.mubr.f32.gmra.mxu0 %v136_v36 }
  0x49   :  { %2344 = vmatprep.mubr.f32.mxu0 %v137_v37 }
  0x4c   :  { %2345 = vmatmul.mubr.f32.gmra.mxu0 %v138_v38 }
  0x4d   :  { %2347 = vmatprep.mubr.f32.mxu0 %v139_v39 }
  0x50   :  { %2348 = vmatmul.mubr.f32.gmra.mxu0 %v140_v40 }
  0x51   :  { %2350 = vmatprep.mubr.f32.mxu0 %v141_v41 }
  0x54   :  { %2351 = vmatmul.mubr.f32.gmra.mxu0 %v142_v42 }
  0x55   :  { %2353 = vmatprep.mubr.f32.mxu0 %v143_v43 }
  0x58   :  { %2354 = vmatmul.mubr.f32.gmra.mxu0 %v144_v44 }
  0x59   :  { %2444 = vmatprep.mubr.f32.mxu0 %v3049_v17 }
  0xfc   :  { %v2334_v48 = vpop.f32.mrf.mxu0 }
  0xfd   :  { %v3003_v52 = vadd.f32 %v2334_v48, %v1974_v49 }
  0xfe   :  { %v215_v50 = vpop.f32.mrf.mxu0 }
  0xff   :  { %v3001_v51 = vadd.f32 %v1974_v49, %v215_v50 }
 0x100   :  { %v2337_v53 = vpop.f32.mrf.mxu0 }
 0x101   :  { %2388 = vmatprep.mubr.f32.mxu1 %v3001_v51  ;;  %v3009_v56 = vadd.f32 %v2337_v53, %v1974_v49 }
 0x102   :  { %v225_v54 = vpop.f32.mrf.mxu0  ;;  %2389 = vmatmul.mubr.f32.vlgmr.msra.gmra.mxu1 %v3003_v52 }
 0x103   :  { %v3007_v55 = vadd.f32 %v1974_v49, %v225_v54  ;;  %2469 = vmatpush3.msra.mxu1 %v341_v18 }
 0x104   :  { %v2340_v57 = vpop.f32.mrf.mxu0  ;;  %2470 = vmatprep.subr.mxu1 %v340_v19 }
 0x105   :  { %2391 = vmatprep.mubr.f32.mxu1 %v3007_v55  ;;  %v3015_v60 = vadd.f32 %v2340_v57, %v1974_v49  ;;  %2471 = vmatpush3.msra.mxu1 %v340_v19 }
 0x106   :  { %v235_v58 = vpop.f32.mrf.mxu0  ;;  %2392 = vmatmul.mubr.f32.gmra.mxu1 %v3009_v56  ;;  %2472 = vmatprep.subr.mxu1 %v339_v20 }
 0x107   :  { %v3013_v59 = vadd.f32 %v1974_v49, %v235_v58  ;;  %2473 = vmatpush3.msra.mxu1 %v339_v20 }
 0x108   :  { %v2343_v61 = vpop.f32.mrf.mxu0  ;;  %2474 = vmatprep.subr.mxu1 %v338_v21 }
 0x109   :  { %2394 = vmatprep.mubr.f32.mxu1 %v3013_v59  ;;  %v3021_v0 = vadd.f32 %v2343_v61, %v1974_v49  ;;  %2475 = vmatpush3.msra.mxu1 %v338_v21 }
 0x10a   :  { %v245_v62 = vpop.f32.mrf.mxu0  ;;  %2395 = vmatmul.mubr.f32.gmra.mxu1 %v3015_v60  ;;  %2476 = vmatprep.subr.mxu1 %v337_v22 }
 0x10b   :  { %v3019_v63 = vadd.f32 %v1974_v49, %v245_v62  ;;  %2477 = vmatpush3.msra.mxu1 %v337_v22 }
 0x10c   :  { %v2346_v1 = vpop.f32.mrf.mxu0  ;;  %2478 = vmatprep.subr.mxu1 %v336_v23 }
 0x10d   :  { %2397 = vmatprep.mubr.f32.mxu1 %v3019_v63  ;;  %v3027_v4 = vadd.f32 %v2346_v1, %v1974_v49  ;;  %2479 = vmatpush3.msra.mxu1 %v336_v23 }
 0x10e   :  { %v255_v2 = vpop.f32.mrf.mxu0  ;;  %2398 = vmatmul.mubr.f32.gmra.mxu1 %v3021_v0  ;;  %2480 = vmatprep.subr.mxu1 %v335_v24 }
 0x10f   :  { %v3025_v3 = vadd.f32 %v1974_v49, %v255_v2  ;;  %2481 = vmatpush3.msra.mxu1 %v335_v24 }
 0x110   :  { %v2349_v5 = vpop.f32.mrf.mxu0  ;;  %2482 = vmatprep.subr.mxu1 %v334_v25 }
 0x111   :  { %2400 = vmatprep.mubr.f32.mxu1 %v3025_v3  ;;  %v3033_v8 = vadd.f32 %v2349_v5, %v1974_v49  ;;  %2483 = vmatpush3.msra.mxu1 %v334_v25 }
 0x112   :  { %v265_v6 = vpop.f32.mrf.mxu0  ;;  %2401 = vmatmul.mubr.f32.gmra.mxu1 %v3027_v4  ;;  %2484 = vmatprep.subr.mxu1 %v333_v26 }
 0x113   :  { %v3031_v7 = vadd.f32 %v1974_v49, %v265_v6  ;;  %2485 = vmatpush3.msra.mxu1 %v333_v26 }
 0x114   :  { %v2352_v9 = vpop.f32.mrf.mxu0  ;;  %2486 = vmatprep.subr.mxu1 %v332_v27 }
 0x115   :  { %2403 = vmatprep.mubr.f32.mxu1 %v3031_v7  ;;  %v3039_v12 = vadd.f32 %v2352_v9, %v1974_v49  ;;  %2487 = vmatpush3.msra.mxu1 %v332_v27 }
 0x116   :  { %v275_v10 = vpop.f32.mrf.mxu0  ;;  %2404 = vmatmul.mubr.f32.gmra.mxu1 %v3033_v8  ;;  %2488 = vmatprep.subr.mxu1 %v331_v28 }
 0x117   :  { %v3037_v11 = vadd.f32 %v1974_v49, %v275_v10  ;;  %2489 = vmatpush3.msra.mxu1 %v331_v28 }
 0x118   :  { %v2355_v13 = vpop.f32.mrf.mxu0  ;;  %2490 = vmatprep.subr.mxu1 %v330_v29 }
 0x119   :  { %2406 = vmatprep.mubr.f32.mxu1 %v3037_v11  ;;  %v3045_v16 = vadd.f32 %v2355_v13, %v1974_v49  ;;  %2491 = vmatpush3.msra.mxu1 %v330_v29 }
 0x11a   :  { %v285_v14 = vpop.f32.mrf.mxu0  ;;  %2407 = vmatmul.mubr.f32.gmra.mxu1 %v3039_v12  ;;  %2492 = vmatprep.subr.mxu1 %v329_v30 }
 0x11b   :  { %v3043_v15 = vadd.f32 %v1974_v49, %v285_v14  ;;  %2493 = vmatpush3.msra.mxu1 %v329_v30 }
 0x11d   :  { %2409 = vmatprep.mubr.f32.mxu1 %v3043_v15 }
 0x11e   :  { %2410 = vmatmul.mubr.f32.gmra.mxu1 %v3045_v16 }
 0x1c2   :  { %v3052_v31 = vpop.f32.mrf.mxu1 }
 0x1c3   :  { %v420_v27 = vadd.f32 %v3052_v31, %v1975_v45  ;;  %v3064_v31 = vld [vmem:[#allocation4 + $0x18] sm:$0xff] }
 0x1c4   :  { %v3054_v32 = vpop.f32.mrf.mxu1 }
 0x1c5   :  { %v415_v29 = vadd.f32 %v1975_v45, %v3054_v32  ;;  %v3066_v32 = vld [vmem:[#allocation4 + $0x20] sm:$0xff] }
 0x1c6   :  { %v2393_v33 = vpop.f32.mrf.mxu1 }
 0x1c7   :  { %v430_v23 = vadd.f32 %v2393_v33, %v1975_v45  ;;  %v493_v33 = vmax.f32 %v415_v29, 0.0 }
 0x1c8   :  { %v424_v34 = vpop.f32.mrf.mxu1 }
 0x1c9   :  { %v425_v25 = vadd.f32 %v1975_v45, %v424_v34  ;;  %v496_v28 = vmax.f32 %v430_v23, 0.0  ;;  %v3058_v34 = vld [vmem:[#allocation4 + $0x8] sm:$0xff] }
 0x1ca   :  { %v2396_v35 = vpop.f32.mrf.mxu1  ;;  %v3137_v23 = vld [vmem:[#allocation4 + $0x128] sm:$0xff] }
 0x1cb   :  { %v440_v19 = vadd.f32 %v2396_v35, %v1975_v45  ;;  %v495_v30 = vmax.f32 %v425_v25, 0.0  ;;  %v494_v35 = vmax.f32 %v420_v27, 0.0  ;;  %3737 = vst [vmem:[#allocation13_spill] sm:$0xff] %v3137_v23 }
 0x1cc   :  { %v434_v36 = vpop.f32.mrf.mxu1 }
 0x1cd   :  { %v435_v21 = vadd.f32 %v1975_v45, %v434_v36  ;;  %v498_v24 = vmax.f32 %v440_v19, 0.0  ;;  %v3060_v36 = vld [vmem:[#allocation4 + $0x10] sm:$0xff] }
 0x1ce   :  { %v2399_v37 = vpop.f32.mrf.mxu1 }
 0x1cf   :  { %v450_v10 = vadd.f32 %v2399_v37, %v1975_v45  ;;  %v497_v26 = vmax.f32 %v435_v21, 0.0  ;;  %v3070_v37 = vld [vmem:[#allocation4 + $0x28] sm:$0xff]  ;;  %v3131_v21 = vld [vmem:[#allocation4 + $0x120] sm:$0xff] }
 0x1d0   :  { %v444_v38 = vpop.f32.mrf.mxu1  ;;  %3736 = vst [vmem:[#allocation12_spill] sm:$0xff] %v3131_v21 }
 0x1d1   :  { %v445_v14 = vadd.f32 %v1975_v45, %v444_v38  ;;  %v500_v20 = vmax.f32 %v450_v10, 0.0  ;;  %v3072_v38 = vld [vmem:[#allocation4 + $0x30] sm:$0xff] }
 0x1d2   :  { %v2402_v39 = vpop.f32.mrf.mxu1 }
 0x1d3   :  { %v460_v2 = vadd.f32 %v2402_v39, %v1975_v45  ;;  %v499_v22 = vmax.f32 %v445_v14, 0.0  ;;  %v3076_v39 = vld [vmem:[#allocation4 + $0x38] sm:$0xff] }
 0x1d4   :  { %v454_v40 = vpop.f32.mrf.mxu1 }
 0x1d5   :  { %v455_v6 = vadd.f32 %v1975_v45, %v454_v40  ;;  %v502_v13 = vmax.f32 %v460_v2, 0.0  ;;  %v3078_v40 = vld [vmem:[#allocation4 + $0x40] sm:$0xff]  ;;  %v3115_v2 = vld [vmem:[#allocation4 + $0x110] sm:$0xff] }
 0x1d6   :  { %v2405_v41 = vpop.f32.mrf.mxu1  ;;  %3733 = vst [vmem:[#allocation9_spill] sm:$0xff] %v3115_v2 }
 0x1d7   :  { %v470_v58 = vadd.f32 %v2405_v41, %v1975_v45  ;;  %v501_v18 = vmax.f32 %v455_v6, 0.0  ;;  %v3082_v41 = vld [vmem:[#allocation4 + $0x48] sm:$0xff]  ;;  %v3120_v6 = vld [vmem:[#allocation4 + $0x118] sm:$0xff] }
 0x1d8   :  { %v464_v42 = vpop.f32.mrf.mxu1  ;;  %3734 = vst [vmem:[#allocation10_spill] sm:$0xff] %v3120_v6 }
 0x1d9   :  { %v465_v62 = vadd.f32 %v1975_v45, %v464_v42  ;;  %v504_v5 = vmax.f32 %v470_v58, 0.0  ;;  %v3084_v42 = vld [vmem:[#allocation4 + $0x50] sm:$0xff]  ;;  %v295_v58 = vld [vmem:[%s3666_s1 + $0x8] sm:$0xff] }
 0x1da   :  { %v2408_v43 = vpop.f32.mrf.mxu1 }
 0x1db   :  { %v480_v49 = vadd.f32 %v2408_v43, %v1975_v45  ;;  %v503_v9 = vmax.f32 %v465_v62, 0.0  ;;  %v3088_v43 = vld [vmem:[#allocation4 + $0x58] sm:$0xff] }
 0x1dc   :  { %v474_v44 = vpop.f32.mrf.mxu1 }
 0x1dd   :  { %v475_v54 = vadd.f32 %v1975_v45, %v474_v44  ;;  %v506_v61 = vmax.f32 %v480_v49, 0.0  ;;  %v3090_v44 = vld [vmem:[#allocation4 + $0x60] sm:$0xff] }
 0x1de   :  { %v2411_v46 = vpop.f32.mrf.mxu1  ;;  %v327_v49 = vld [vmem:[#allocation2 + $0x110] sm:$0xff] }
 0x1df   :  { %v490_v47 = vadd.f32 %v2411_v46, %v1975_v45  ;;  %v505_v1 = vmax.f32 %v475_v54, 0.0  ;;  %v3096_v46 = vld [vmem:[#allocation4 + $0x70] sm:$0xff] }
 0x1e0   :  { %v484_v48 = vpop.f32.mrf.mxu1  ;;  %v294_v54 = vld [vmem:[%s3666_s1] sm:$0xff] }
 0x1e1   :  { %v508_v50 = vmax.f32 %v490_v47, 0.0  ;;  %v485_v53 = vadd.f32 %v1975_v45, %v484_v48  ;;  %v3094_v45 = vld [vmem:[#allocation4 + $0x68] sm:$0xff]  ;;  %v3100_v47 = vld [vmem:[#allocation4 + $0x78] sm:$0xff] }
 0x1e2   :  { %v328_v48 = vld [vmem:[#allocation2 + $0x118] sm:$0xff] }
 0x1e3   :  { %v507_v57 = vmax.f32 %v485_v53, 0.0  ;;  %2412 = vmatprep.subr.mxu0 %v508_v50  ;;  %2494 = vmatprep.subr.mxu1 %v328_v48  ;;  %v3103_v53 = vld [vmem:[#allocation4 + $0x100] sm:$0xff] }
 0x1e4   :  { %2413 = vmatpush3.msra.mxu0 %v508_v50  ;;  %2495 = vmatpush3.msra.mxu1 %v328_v48  ;;  %v326_v50 = vld [vmem:[#allocation2 + $0x108] sm:$0xff]  ;;  %3732 = vst [vmem:[#allocation8_spill] sm:$0xff] %v3103_v53 }
 0x1e5   :  { %2414 = vmatprep.subr.mxu0 %v507_v57  ;;  %2496 = vmatprep.subr.mxu1 %v327_v49  ;;  %v3155_v48 = vld [vmem:[#allocation4 + $0x138] sm:$0xff] }
 0x1e6   :  { %2415 = vmatpush3.msra.mxu0 %v507_v57  ;;  %2497 = vmatpush3.msra.mxu1 %v327_v49  ;;  %v3108_v57 = vld [vmem:[#allocation4 + $0x108] sm:$0xff]  ;;  %3741 = vst [vmem:[#allocation17_spill] sm:$0xff] %v3155_v48 }
 0x1e7   :  { %2416 = vmatprep.subr.mxu0 %v506_v61  ;;  %2498 = vmatprep.subr.mxu1 %v326_v50  ;;  %v510_v62 = vmul.f32 %v295_v58, %v3108_v57  ;;  %v301_v49 = vld [vmem:[%s3666_s1 + $0x38] sm:$0xff] }
 0x1e8   :  { %2417 = vmatpush3.msra.mxu0 %v506_v61  ;;  %2499 = vmatpush3.msra.mxu1 %v326_v50  ;;  %v509_v61 = vmul.f32 %v294_v54, %v3103_v53 }
 0x1e9   :  { %2418 = vmatprep.subr.mxu0 %v505_v1 }
 0x1ea   :  { %2419 = vmatpush3.msra.mxu0 %v505_v1 }
 0x1eb   :  { %2420 = vmatprep.subr.mxu0 %v504_v5 }
 0x1ec   :  { %2421 = vmatpush3.msra.mxu0 %v504_v5  ;;  %v296_v5 = vld [vmem:[%s3666_s1 + $0x10] sm:$0xff] }
 0x1ed   :  { %2422 = vmatprep.subr.mxu0 %v503_v9  ;;  %v511_v14 = vmul.f32 %v296_v5, %v3115_v2  ;;  %v3167_v5 = vld [vmem:[#allocation4 + $0x140] sm:$0xff] }
 0x1ee   :  { %2423 = vmatpush3.msra.mxu0 %v503_v9  ;;  %v297_v9 = vld [vmem:[%s3666_s1 + $0x18] sm:$0xff]  ;;  %3744 = vst [vmem:[#allocation20_spill] sm:$0xff] %v3167_v5 }
 0x1ef   :  { %2424 = vmatprep.subr.mxu0 %v502_v13  ;;  %v512_v19 = vmul.f32 %v297_v9, %v3120_v6  ;;  %v302_v9 = vld [vmem:[%s3666_s1 + $0x40] sm:$0xff] }
 0x1f0   :  { %2425 = vmatpush3.msra.mxu0 %v502_v13 }
 0x1f1   :  { %2426 = vmatprep.subr.mxu0 %v501_v18 }
 0x1f2   :  { %2427 = vmatpush3.msra.mxu0 %v501_v18 }
 0x1f3   :  { %2428 = vmatprep.subr.mxu0 %v500_v20 }
 0x1f4   :  { %2429 = vmatpush3.msra.mxu0 %v500_v20 }
 0x1f5   :  { %2430 = vmatprep.subr.mxu0 %v499_v22 }
 0x1f6   :  { %2431 = vmatpush3.msra.mxu0 %v499_v22  ;;  %v298_v22 = vld [vmem:[%s3666_s1 + $0x20] sm:$0xff] }
 0x1f7   :  { %2432 = vmatprep.subr.mxu0 %v498_v24  ;;  %v513_v27 = vmul.f32 %v298_v22, %v3131_v21  ;;  %v517_v22 = vmul.f32 %v302_v9, %v3167_v5  ;;  %v306_v5 = vld [vmem:[%s3666_s1 + $0x60] sm:$0xff] }
 0x1f8   :  { %2433 = vmatpush3.msra.mxu0 %v498_v24  ;;  %v299_v24 = vld [vmem:[%s3666_s1 + $0x28] sm:$0xff] }
 0x1f9   :  { %2434 = vmatprep.subr.mxu0 %v497_v26  ;;  %v514_v29 = vmul.f32 %v299_v24, %v3137_v23 }
 0x1fa   :  { %2435 = vmatpush3.msra.mxu0 %v497_v26 }
 0x1fb   :  { %2436 = vmatprep.subr.mxu0 %v496_v28 }
 0x1fc   :  { %2437 = vmatpush3.msra.mxu0 %v496_v28 }
 0x1fd   :  { %2438 = vmatprep.subr.mxu0 %v495_v30 }
 0x1fe   :  { %2439 = vmatpush3.msra.mxu0 %v495_v30 }
 0x1ff   :  { %2440 = vmatprep.subr.mxu0 %v494_v35 }
 0x200   :  { %2441 = vmatpush3.msra.mxu0 %v494_v35  ;;  %v3149_v35 = vld [vmem:[#allocation4 + $0x130] sm:$0xff] }
 0x201   :  { %2442 = vmatprep.subr.mxu0 %v493_v33  ;;  %3740 = vst [vmem:[#allocation16_spill] sm:$0xff] %v3149_v35 }
 0x202   :  { %2443 = vmatpush3.msra.mxu0 %v493_v33  ;;  %v300_v33 = vld [vmem:[%s3666_s1 + $0x30] sm:$0xff] }
 0x203   :  { %2445 = vmatmul.mubr.f32.vlgmr.msra.gmra.mxu0 %v3058_v34  ;;  %v515_v58 = vmul.f32 %v300_v33, %v3149_v35  ;;  %v3191_v33 = vld [vmem:[#allocation4 + $0x158] sm:$0xff]  ;;  %v1976_v35 = vld [vmem:[#allocation2 + $0x190] ss:$0 sm:$0xff] }
 0x204   :  { %2447 = vmatprep.mubr.f32.mxu0 %v3060_v36  ;;  %3749 = vst [vmem:[#allocation25_spill] sm:$0xff] %v3191_v33 }
 0x207   :  { %2448 = vmatmul.mubr.f32.gmra.mxu0 %v3064_v31 }
 0x208   :  { %2450 = vmatprep.mubr.f32.mxu0 %v3066_v32 }
 0x20b   :  { %2451 = vmatmul.mubr.f32.gmra.mxu0 %v3070_v37 }
 0x20c   :  { %2453 = vmatprep.mubr.f32.mxu0 %v3072_v38 }
 0x20f   :  { %2454 = vmatmul.mubr.f32.gmra.mxu0 %v3076_v39 }
 0x210   :  { %2456 = vmatprep.mubr.f32.mxu0 %v3078_v40 }
 0x213   :  { %2457 = vmatmul.mubr.f32.gmra.mxu0 %v3082_v41 }
 0x214   :  { %2459 = vmatprep.mubr.f32.mxu0 %v3084_v42 }
 0x217   :  { %2460 = vmatmul.mubr.f32.gmra.mxu0 %v3088_v43 }
 0x218   :  { %2462 = vmatprep.mubr.f32.mxu0 %v3090_v44 }
 0x21b   :  { %2463 = vmatmul.mubr.f32.gmra.mxu0 %v3094_v45 }
 0x21c   :  { %2465 = vmatprep.mubr.f32.mxu0 %v3096_v46 }
 0x21f   :  { %2466 = vmatmul.mubr.f32.gmra.mxu0 %v3100_v47 }
 0x2c3   :  { %v2446_v1 = vpop.f32.mrf.mxu0 }
 0x2c4   :  { %v3128_v18 = vadd.f32 %v2446_v1, %v510_v62  ;;  %v516_v62 = vmul.f32 %v301_v49, %v3155_v48  ;;  %v305_v49 = vld [vmem:[%s3666_s1 + $0x58] sm:$0xff] }
 0x2c5   :  { %v591_v10 = vpop.f32.mrf.mxu0  ;;  %v520_v9 = vmul.f32 %v305_v49, %v3191_v33  ;;  %v3221_v33 = vld [vmem:[#allocation4 + $0x170] sm:$0xff] }
 0x2c6   :  { %v3125_v13 = vadd.f32 %v591_v10, %v509_v61  ;;  %v3173_v10 = vld [vmem:[#allocation4 + $0x148] sm:$0xff]  ;;  %3756 = vst [vmem:[#allocation32_spill] sm:$0xff] %v3221_v33 }
 0x2c7   :  { %v2449_v20 = vpop.f32.mrf.mxu0  ;;  %3745 = vst [vmem:[#allocation21_spill] sm:$0xff] %v3173_v10 }
 0x2c8   :  { %3735 = vst [vmem:[#allocation11_spill] sm:$0xff] %v3125_v13  ;;  %2500 = vmatprep.mubr.f32.mxu1 %v3125_v13  ;;  %v3146_v28 = vadd.f32 %v2449_v20, %v512_v19 }
 0x2c9   :  { %v601_v25 = vpop.f32.mrf.mxu0  ;;  %2501 = vmatmul.mubr.f32.vlgmr.msra.gmra.mxu1 %v3128_v18 }
 0x2ca   :  { %v3143_v26 = vadd.f32 %v601_v25, %v511_v14  ;;  %3739 = vst [vmem:[#allocation15_spill] sm:$0xff] %v3146_v28  ;;  %v303_v14 = vld [vmem:[%s3666_s1 + $0x48] sm:$0xff] }
 0x2cb   :  { %v2452_v30 = vpop.f32.mrf.mxu0  ;;  %v518_v25 = vmul.f32 %v303_v14, %v3173_v10  ;;  %v3209_v10 = vld [vmem:[#allocation4 + $0x168] sm:$0xff] }
 0x2cc   :  { %3738 = vst [vmem:[#allocation14_spill] sm:$0xff] %v3143_v26  ;;  %2503 = vmatprep.mubr.f32.mxu1 %v3143_v26  ;;  %v3164_v61 = vadd.f32 %v2452_v30, %v514_v29  ;;  %v3185_v29 = vld [vmem:[#allocation4 + $0x150] sm:$0xff]  ;;  %v304_v30 = vld [vmem:[%s3666_s1 + $0x50] sm:$0xff]  ;;  %3753 = vst [vmem:[#allocation29_spill] sm:$0xff] %v3209_v10 }
 0x2cd   :  { %v611_v50 = vpop.f32.mrf.mxu0  ;;  %2504 = vmatmul.mubr.f32.gmra.mxu1 %v3146_v28  ;;  %3748 = vst [vmem:[#allocation24_spill] sm:$0xff] %v3185_v29 }
 0x2ce   :  { %v3161_v54 = vadd.f32 %v611_v50, %v513_v27  ;;  %3743 = vst [vmem:[#allocation19_spill] sm:$0xff] %v3164_v61 }
 0x2cf   :  { %v2455_v1 = vpop.f32.mrf.mxu0 }
 0x2d0   :  { %3742 = vst [vmem:[#allocation18_spill] sm:$0xff] %v3161_v54  ;;  %2506 = vmatprep.mubr.f32.mxu1 %v3161_v54  ;;  %v3182_v24 = vadd.f32 %v2455_v1, %v516_v62  ;;  %v519_v62 = vmul.f32 %v304_v30, %v3185_v29 }
 0x2d1   :  { %v621_v19 = vpop.f32.mrf.mxu0  ;;  %2507 = vmatmul.mubr.f32.gmra.mxu1 %v3164_v61 }
 0x2d2   :  { %v3179_v20 = vadd.f32 %v621_v19, %v515_v58  ;;  %3747 = vst [vmem:[#allocation23_spill] sm:$0xff] %v3182_v24  ;;  %v3203_v19 = vld [vmem:[#allocation4 + $0x160] sm:$0xff] }
 0x2d3   :  { %v2458_v27 = vpop.f32.mrf.mxu0  ;;  %3752 = vst [vmem:[#allocation28_spill] sm:$0xff] %v3203_v19 }
 0x2d4   :  { %3746 = vst [vmem:[#allocation22_spill] sm:$0xff] %v3179_v20  ;;  %2509 = vmatprep.mubr.f32.mxu1 %v3179_v20  ;;  %v3200_v1 = vadd.f32 %v2458_v27, %v518_v25  ;;  %v521_v27 = vmul.f32 %v306_v5, %v3203_v19  ;;  %v3227_v20 = vld [vmem:[#allocation4 + $0x178] sm:$0xff] }
 0x2d5   :  { %v631_v50 = vpop.f32.mrf.mxu0  ;;  %2510 = vmatmul.mubr.f32.gmra.mxu1 %v3182_v24  ;;  %3757 = vst [vmem:[#allocation33_spill] sm:$0xff] %v3227_v20 }
 0x2d6   :  { %v3197_v58 = vadd.f32 %v631_v50, %v517_v22  ;;  %3751 = vst [vmem:[#allocation27_spill] sm:$0xff] %v3200_v1  ;;  %v307_v22 = vld [vmem:[%s3666_s1 + $0x68] sm:$0xff] }
 0x2d7   :  { %v2461_v14 = vpop.f32.mrf.mxu0  ;;  %v522_v50 = vmul.f32 %v307_v22, %v3209_v10 }
 0x2d8   :  { %3750 = vst [vmem:[#allocation26_spill] sm:$0xff] %v3197_v58  ;;  %2512 = vmatprep.mubr.f32.mxu1 %v3197_v58  ;;  %v3218_v49 = vadd.f32 %v2461_v14, %v520_v9  ;;  %v308_v58 = vld [vmem:[%s3666_s1 + $0x70] sm:$0xff] }
 0x2d9   :  { %v641_v30 = vpop.f32.mrf.mxu0  ;;  %2513 = vmatmul.mubr.f32.gmra.mxu1 %v3200_v1  ;;  %v523_v14 = vmul.f32 %v308_v58, %v3221_v33  ;;  %v1042_v58 = vld [vmem:[#allocation2 + $0x208] sm:$0xff] }
 0x2da   :  { %v3215_v25 = vadd.f32 %v641_v30, %v519_v62  ;;  %3755 = vst [vmem:[#allocation31_spill] sm:$0xff] %v3218_v49  ;;  %v309_v62 = vld [vmem:[%s3666_s1 + $0x78] sm:$0xff] }
 0x2db   :  { %v2464_v29 = vpop.f32.mrf.mxu0  ;;  %v524_v30 = vmul.f32 %v309_v62, %v3227_v20  ;;  %v1040_v62 = vld [vmem:[#allocation2 + $0x1f8] sm:$0xff] }
 0x2dc   :  { %3754 = vst [vmem:[#allocation30_spill] sm:$0xff] %v3215_v25  ;;  %2515 = vmatprep.mubr.f32.mxu1 %v3215_v25  ;;  %v3236_v22 = vadd.f32 %v2464_v29, %v522_v50  ;;  %v1043_v29 = vld [vmem:[#allocation2 + $0x210] sm:$0xff]  ;;  %v1041_v50 = vld [vmem:[#allocation2 + $0x200] sm:$0xff] }
 0x2dd   :  { %v651_v5 = vpop.f32.mrf.mxu0  ;;  %2516 = vmatmul.mubr.f32.gmra.mxu1 %v3218_v49  ;;  %2580 = vmatprep.subr.mxu1 %v1043_v29 }
 0x2de   :  { %v3233_v9 = vadd.f32 %v651_v5, %v521_v27  ;;  %3759 = vst [vmem:[#allocation35_spill] sm:$0xff] %v3236_v22  ;;  %v3247_v27 = vld [vmem:[#allocation4 + $0x80] sm:$0xff]  ;;  %2581 = vmatpush3.msra.mxu1 %v1043_v29  ;;  %v1037_v5 = vld [vmem:[#allocation2 + $0x1e0] sm:$0xff]  ;;  %v1034_v29 = vld [vmem:[#allocation2 + $0x1c8] sm:$0xff] }
 0x2df   :  { %v2467_v19 = vpop.f32.mrf.mxu0  ;;  %2556 = vmatprep.mubr.f32.mxu0 %v3247_v27  ;;  %2582 = vmatprep.subr.mxu1 %v1042_v58 }
 0x2e0   :  { %3758 = vst [vmem:[#allocation34_spill] sm:$0xff] %v3233_v9  ;;  %2518 = vmatprep.mubr.f32.mxu1 %v3233_v9  ;;  %v3243_v1 = vadd.f32 %v2467_v19, %v524_v30  ;;  %2583 = vmatpush3.msra.mxu1 %v1042_v58  ;;  %v1038_v19 = vld [vmem:[#allocation2 + $0x1e8] sm:$0xff]  ;;  %v1035_v30 = vld [vmem:[#allocation2 + $0x1d0] sm:$0xff]  ;;  %v1033_v58 = vld [vmem:[#allocation2 + $0x1c0] sm:$0xff] }
 0x2e1   :  { %v661_v10 = vpop.f32.mrf.mxu0  ;;  %2519 = vmatmul.mubr.f32.gmra.mxu1 %v3236_v22  ;;  %2584 = vmatprep.subr.mxu1 %v1041_v50 }
 0x2e2   :  { %v3241_v25 = vadd.f32 %v661_v10, %v523_v14  ;;  %3761 = vst [vmem:[#allocation37_spill] sm:$0xff] %v3243_v1  ;;  %2585 = vmatpush3.msra.mxu1 %v1041_v50  ;;  %v1039_v10 = vld [vmem:[#allocation2 + $0x1f0] sm:$0xff]  ;;  %v1036_v14 = vld [vmem:[#allocation2 + $0x1d8] sm:$0xff] }
 0x2e3   :  { %2586 = vmatprep.subr.mxu1 %v1040_v62  ;;  %v1032_v50 = vld [vmem:[#allocation2 + $0x1b8] sm:$0xff] }
 0x2e4   :  { %3760 = vst [vmem:[#allocation36_spill] sm:$0xff] %v3241_v25  ;;  %2521 = vmatprep.mubr.f32.mxu1 %v3241_v25  ;;  %2587 = vmatpush3.msra.mxu1 %v1040_v62  ;;  %v1031_v62 = vld [vmem:[#allocation2 + $0x1b0] sm:$0xff] }
 0x2e5   :  { %2522 = vmatmul.mubr.f32.gmra.mxu1 %v3243_v1  ;;  %2588 = vmatprep.subr.mxu1 %v1039_v10 }
 0x2e6   :  { %2589 = vmatpush3.msra.mxu1 %v1039_v10 }
 0x2e7   :  { %2590 = vmatprep.subr.mxu1 %v1038_v19 }
 0x2e8   :  { %2591 = vmatpush3.msra.mxu1 %v1038_v19 }
 0x2e9   :  { %2592 = vmatprep.subr.mxu1 %v1037_v5 }
 0x2ea   :  { %2593 = vmatpush3.msra.mxu1 %v1037_v5 }
 0x2eb   :  { %2594 = vmatprep.subr.mxu1 %v1036_v14 }
 0x2ec   :  { %2595 = vmatpush3.msra.mxu1 %v1036_v14 }
 0x2ed   :  { %2596 = vmatprep.subr.mxu1 %v1035_v30 }
 0x2ee   :  { %2597 = vmatpush3.msra.mxu1 %v1035_v30 }
 0x2ef   :  { %2598 = vmatprep.subr.mxu1 %v1034_v29 }
 0x2f0   :  { %2599 = vmatpush3.msra.mxu1 %v1034_v29 }
 0x2f1   :  { %2600 = vmatprep.subr.mxu1 %v1033_v58 }
 0x2f2   :  { %2601 = vmatpush3.msra.mxu1 %v1033_v58 }
 0x2f3   :  { %2602 = vmatprep.subr.mxu1 %v1032_v50 }
 0x2f4   :  { %2603 = vmatpush3.msra.mxu1 %v1032_v50 }
 0x2f5   :  { %2604 = vmatprep.subr.mxu1 %v1031_v62 }
 0x2f6   :  { %2605 = vmatpush3.msra.mxu1 %v1031_v62 }
 0x389   :  { %v3250_v10 = vpop.f32.mrf.mxu1 }
 0x38b   :  { %v3252_v19 = vpop.f32.mrf.mxu1 }
 0x38d   :  { %v2505_v5 = vpop.f32.mrf.mxu1 }
 0x38f   :  { %v766_v14 = vpop.f32.mrf.mxu1 }
 0x391   :  { %v2508_v25 = vpop.f32.mrf.mxu1 }
 0x393   :  { %v776_v33 = vpop.f32.mrf.mxu1 }
 0x395   :  { %v2511_v30 = vpop.f32.mrf.mxu1 }
 0x397   :  { %v786_v1 = vpop.f32.mrf.mxu1 }
 0x399   :  { %v2514_v20 = vpop.f32.mrf.mxu1 }
 0x39a   :  { %v802_v13 = vadd.f32 %v2514_v20, %v1976_v35  ;;  %v762_v20 = vadd.f32 %v3250_v10, %v1976_v35  ;;  %v3264_v10 = vld [vmem:[#allocation4 + $0xa0] sm:$0xff] }
 0x39b   :  { %v796_v29 = vpop.f32.mrf.mxu1 }
 0x39d   :  { %v2517_v9 = vpop.f32.mrf.mxu1 }
 0x39e   :  { %v812_v26 = vadd.f32 %v2517_v9, %v1976_v35 }
 0x39f   :  { %v806_v22 = vpop.f32.mrf.mxu1 }
 0x3a0   :  { %v807_v28 = vadd.f32 %v1976_v35, %v806_v22  ;;  %v846_v53 = vmax.f32 %v812_v26, 0.0  ;;  %v3256_v22 = vld [vmem:[#allocation4 + $0x88] sm:$0xff] }
 0x3a1   :  { %v2520_v58 = vpop.f32.mrf.mxu1 }
 0x3a2   :  { %v822_v48 = vadd.f32 %v2520_v58, %v1976_v35  ;;  %v845_v58 = vmax.f32 %v807_v28, 0.0 }
 0x3a3   :  { %v816_v49 = vpop.f32.mrf.mxu1 }
 0x3a4   :  { %v817_v61 = vadd.f32 %v1976_v35, %v816_v49  ;;  %v848_v2 = vmax.f32 %v822_v48, 0.0 }
 0x3a5   :  { %v2523_v50 = vpop.f32.mrf.mxu1 }
 0x3a6   :  { %v832_v24 = vadd.f32 %v2523_v50, %v1976_v35  ;;  %v847_v6 = vmax.f32 %v817_v61, 0.0  ;;  %v797_v50 = vadd.f32 %v1976_v35, %v796_v29  ;;  %v3276_v29 = vld [vmem:[#allocation4 + $0xc0] sm:$0xff] }
 0x3a7   :  { %v826_v62 = vpop.f32.mrf.mxu1 }
 0x3a8   :  { %v850_v54 = vmax.f32 %v832_v24, 0.0  ;;  %v827_v21 = vadd.f32 %v1976_v35, %v826_v62  ;;  %v792_v24 = vadd.f32 %v2511_v30, %v1976_v35  ;;  %v843_v48 = vmax.f32 %v797_v50, 0.0  ;;  %v3274_v30 = vld [vmem:[#allocation4 + $0xb8] sm:$0xff]  ;;  %v3280_v62 = vld [vmem:[#allocation4 + $0xc8] sm:$0xff]  ;;  %v3282_v50 = vld [vmem:[#allocation4 + $0xd0] sm:$0xff] }
 0x3aa   :  { %v849_v23 = vmax.f32 %v827_v21, 0.0  ;;  %2524 = vmatprep.subr.mxu0 %v850_v54  ;;  %v844_v21 = vmax.f32 %v802_v13, 0.0  ;;  %v842_v61 = vmax.f32 %v792_v24, 0.0  ;;  %v3288_v24 = vld [vmem:[#allocation4 + $0xe0] sm:$0xff] }
 0x3ab   :  { %2525 = vmatpush3.msra.mxu0 %v850_v54  ;;  %v787_v54 = vadd.f32 %v1976_v35, %v786_v1 }
 0x3ac   :  { %2526 = vmatprep.subr.mxu0 %v849_v23 }
 0x3ad   :  { %2527 = vmatpush3.msra.mxu0 %v849_v23  ;;  %v782_v23 = vadd.f32 %v2508_v25, %v1976_v35  ;;  %v841_v26 = vmax.f32 %v787_v54, 0.0  ;;  %v757_v25 = vadd.f32 %v1976_v35, %v3252_v19  ;;  %v3268_v19 = vld [vmem:[#allocation4 + $0xa8] sm:$0xff]  ;;  %v3294_v54 = vld [vmem:[#allocation4 + $0xf0] sm:$0xff] }
 0x3ae   :  { %2528 = vmatprep.subr.mxu0 %v848_v2 }
 0x3af   :  { %2529 = vmatpush3.msra.mxu0 %v848_v2  ;;  %v777_v2 = vadd.f32 %v1976_v35, %v776_v33  ;;  %v840_v28 = vmax.f32 %v782_v23, 0.0  ;;  %v836_v33 = vmax.f32 %v762_v20, 0.0  ;;  %v835_v9 = vmax.f32 %v757_v25, 0.0  ;;  %v1030_v23 = vld [vmem:[#allocation2 + $0x1a8] sm:$0xff]  ;;  %v3310_v20 = vld [vmem:[#allocation4 + $0x190] sm:$0xff] }
 0x3b0   :  { %2530 = vmatprep.subr.mxu0 %v847_v6  ;;  %2606 = vmatprep.subr.mxu1 %v1030_v23  ;;  %3763 = vst [vmem:[#allocation39_spill] sm:$0xff] %v3310_v20  ;;  %v3314_v25 = vld [vmem:[#allocation4 + $0x198] sm:$0xff] }
 0x3b1   :  { %2531 = vmatpush3.msra.mxu0 %v847_v6  ;;  %v772_v6 = vadd.f32 %v2505_v5, %v1976_v35  ;;  %v839_v13 = vmax.f32 %v777_v2, 0.0  ;;  %v3258_v5 = vld [vmem:[#allocation4 + $0x90] sm:$0xff]  ;;  %2607 = vmatpush3.msra.mxu1 %v1030_v23  ;;  %v1028_v2 = vld [vmem:[#allocation2 + $0x198] sm:$0xff]  ;;  %3765 = vst [vmem:[#allocation41_spill] sm:$0xff] %v3314_v25 }
 0x3b2   :  { %2532 = vmatprep.subr.mxu0 %v846_v53 }
 0x3b3   :  { %2533 = vmatpush3.msra.mxu0 %v846_v53  ;;  %v767_v53 = vadd.f32 %v1976_v35, %v766_v14  ;;  %v838_v1 = vmax.f32 %v772_v6, 0.0  ;;  %v3262_v35 = vld [vmem:[#allocation4 + $0x98] sm:$0xff]  ;;  %v3270_v14 = vld [vmem:[#allocation4 + $0xb0] sm:$0xff]  ;;  %v3304_v6 = vld [vmem:[#allocation4 + $0x188] sm:$0xff] }
 0x3b4   :  { %2534 = vmatprep.subr.mxu0 %v845_v58 }
 0x3b5   :  { %2535 = vmatpush3.msra.mxu0 %v845_v58  ;;  %v837_v49 = vmax.f32 %v767_v53, 0.0  ;;  %v3286_v58 = vld [vmem:[#allocation4 + $0xd8] sm:$0xff] }
 0x3b6   :  { %2536 = vmatprep.subr.mxu0 %v844_v21 }
 0x3b7   :  { %2537 = vmatpush3.msra.mxu0 %v844_v21  ;;  %v3292_v21 = vld [vmem:[#allocation4 + $0xe8] sm:$0xff] }
 0x3b8   :  { %2538 = vmatprep.subr.mxu0 %v843_v48 }
 0x3b9   :  { %2539 = vmatpush3.msra.mxu0 %v843_v48  ;;  %v3298_v48 = vld [vmem:[#allocation4 + $0xf8] sm:$0xff] }
 0x3ba   :  { %2540 = vmatprep.subr.mxu0 %v842_v61 }
 0x3bb   :  { %2541 = vmatpush3.msra.mxu0 %v842_v61  ;;  %v1029_v61 = vld [vmem:[#allocation2 + $0x1a0] sm:$0xff] }
 0x3bc   :  { %2542 = vmatprep.subr.mxu0 %v841_v26  ;;  %2608 = vmatprep.subr.mxu1 %v1029_v61 }
 0x3bd   :  { %2543 = vmatpush3.msra.mxu0 %v841_v26  ;;  %2609 = vmatpush3.msra.mxu1 %v1029_v61  ;;  %v3302_v26 = vld [vmem:[#allocation4 + $0x180] sm:$0xff] }
 0x3be   :  { %2544 = vmatprep.subr.mxu0 %v840_v28  ;;  %2610 = vmatprep.subr.mxu1 %v1028_v2  ;;  %3762 = vst [vmem:[#allocation38_spill] sm:$0xff] %v3302_v26  ;;  %v851_v53 = vmul.f32 %v3001_v51, %v3302_v26  ;;  %v854_v51 = vmul.f32 %v3009_v56, %v3314_v25 }
 0x3bf   :  { %2545 = vmatpush3.msra.mxu0 %v840_v28  ;;  %2611 = vmatpush3.msra.mxu1 %v1028_v2  ;;  %v3328_v2 = vld [vmem:[#allocation4 + $0x1a8] sm:$0xff] }
 0x3c0   :  { %2546 = vmatprep.subr.mxu0 %v839_v13  ;;  %3768 = vst [vmem:[#allocation44_spill] sm:$0xff] %v3328_v2  ;;  %v856_v56 = vmul.f32 %v3015_v60, %v3328_v2  ;;  %v3352_v2 = vld [vmem:[#allocation4 + $0x1c0] sm:$0xff] }
 0x3c1   :  { %2547 = vmatpush3.msra.mxu0 %v839_v13  ;;  %3774 = vst [vmem:[#allocation50_spill] sm:$0xff] %v3352_v2 }
 0x3c2   :  { %2548 = vmatprep.subr.mxu0 %v838_v1 }
 0x3c3   :  { %2549 = vmatpush3.msra.mxu0 %v838_v1 }
 0x3c4   :  { %2550 = vmatprep.subr.mxu0 %v837_v49 }
 0x3c5   :  { %2551 = vmatpush3.msra.mxu0 %v837_v49 }
 0x3c6   :  { %2552 = vmatprep.subr.mxu0 %v836_v33 }
 0x3c7   :  { %2553 = vmatpush3.msra.mxu0 %v836_v33 }
 0x3c8   :  { %2554 = vmatprep.subr.mxu0 %v835_v9 }
 0x3c9   :  { %2555 = vmatpush3.msra.mxu0 %v835_v9  ;;  %v853_v9 = vmul.f32 %v3007_v55, %v3310_v20 }
 0x3ca   :  { %2557 = vmatmul.mubr.f32.vlgmr.msra.gmra.mxu0 %v3256_v22 }
 0x3cb   :  { %2559 = vmatprep.mubr.f32.mxu0 %v3258_v5 }
 0x3ce   :  { %2560 = vmatmul.mubr.f32.gmra.mxu0 %v3262_v35 }
 0x3cf   :  { %2562 = vmatprep.mubr.f32.mxu0 %v3264_v10 }
 0x3d2   :  { %2563 = vmatmul.mubr.f32.gmra.mxu0 %v3268_v19 }
 0x3d3   :  { %2565 = vmatprep.mubr.f32.mxu0 %v3270_v14 }
 0x3d6   :  { %2566 = vmatmul.mubr.f32.gmra.mxu0 %v3274_v30 }
 0x3d7   :  { %2568 = vmatprep.mubr.f32.mxu0 %v3276_v29 }
 0x3da   :  { %2569 = vmatmul.mubr.f32.gmra.mxu0 %v3280_v62 }
 0x3db   :  { %2571 = vmatprep.mubr.f32.mxu0 %v3282_v50 }
 0x3de   :  { %2572 = vmatmul.mubr.f32.gmra.mxu0 %v3286_v58 }
 0x3df   :  { %2574 = vmatprep.mubr.f32.mxu0 %v3288_v24 }
 0x3e2   :  { %2575 = vmatmul.mubr.f32.gmra.mxu0 %v3292_v21 }
 0x3e3   :  { %2577 = vmatprep.mubr.f32.mxu0 %v3294_v54 }
 0x3e6   :  { %2578 = vmatmul.mubr.f32.gmra.mxu0 %v3298_v48 }
 0x3e7   :  { %2668 = vmatprep.mubr.f32.mxu0 %v3049_v17  ;;  %v852_v17 = vmul.f32 %v3003_v52, %v3304_v6  ;;  %v3324_v52 = vld [vmem:[#allocation4 + $0x1a0] sm:$0xff] }
 0x3e8   :  { %3766 = vst [vmem:[#allocation42_spill] sm:$0xff] %v3324_v52  ;;  %v855_v55 = vmul.f32 %v3013_v59, %v3324_v52 }
 0x48a   :  { %v2558_v28 = vpop.f32.mrf.mxu0 }
 0x48b   :  { %v3316_v49 = vadd.f32 %v2558_v28, %v852_v17 }
 0x48c   :  { %v933_v13 = vpop.f32.mrf.mxu0 }
 0x48d   :  { %v3312_v1 = vadd.f32 %v933_v13, %v851_v53  ;;  %v3338_v13 = vld [vmem:[#allocation4 + $0x1b0] sm:$0xff] }
 0x48e   :  { %v2561_v33 = vpop.f32.mrf.mxu0  ;;  %3770 = vst [vmem:[#allocation46_spill] sm:$0xff] %v3338_v13  ;;  %v857_v59 = vmul.f32 %v3019_v63, %v3338_v13  ;;  %v859_v63 = vmul.f32 %v3025_v3, %v3352_v2 }
 0x48f   :  { %3764 = vst [vmem:[#allocation40_spill] sm:$0xff] %v3312_v1  ;;  %2612 = vmatprep.mubr.f32.mxu1 %v3312_v1  ;;  %v3330_v28 = vadd.f32 %v2561_v33, %v854_v51 }
 0x490   :  { %v943_v23 = vpop.f32.mrf.mxu0  ;;  %2613 = vmatmul.mubr.f32.vlgmr.msra.gmra.mxu1 %v3316_v49 }
 0x491   :  { %v3326_v61 = vadd.f32 %v943_v23, %v853_v9  ;;  %3769 = vst [vmem:[#allocation45_spill] sm:$0xff] %v3330_v28  ;;  %v3342_v23 = vld [vmem:[#allocation4 + $0x1b8] sm:$0xff] }
 0x492   :  { %v2564_v53 = vpop.f32.mrf.mxu0  ;;  %3772 = vst [vmem:[#allocation48_spill] sm:$0xff] %v3342_v23  ;;  %v858_v60 = vmul.f32 %v3021_v0, %v3342_v23  ;;  %v3366_v23 = vld [vmem:[#allocation4 + $0x1d0] sm:$0xff] }
 0x493   :  { %3767 = vst [vmem:[#allocation43_spill] sm:$0xff] %v3326_v61  ;;  %2615 = vmatprep.mubr.f32.mxu1 %v3326_v61  ;;  %v3344_v33 = vadd.f32 %v2564_v53, %v856_v56  ;;  %3778 = vst [vmem:[#allocation54_spill] sm:$0xff] %v3366_v23  ;;  %v861_v3 = vmul.f32 %v3031_v7, %v3366_v23 }
 0x494   :  { %v953_v17 = vpop.f32.mrf.mxu0  ;;  %2616 = vmatmul.mubr.f32.gmra.mxu1 %v3330_v28 }
 0x495   :  { %v3340_v9 = vadd.f32 %v953_v17, %v855_v55  ;;  %3773 = vst [vmem:[#allocation49_spill] sm:$0xff] %v3344_v33  ;;  %v3356_v17 = vld [vmem:[#allocation4 + $0x1c8] sm:$0xff] }
 0x496   :  { %v2567_v51 = vpop.f32.mrf.mxu0  ;;  %3776 = vst [vmem:[#allocation52_spill] sm:$0xff] %v3356_v17  ;;  %v860_v0 = vmul.f32 %v3027_v4, %v3356_v17  ;;  %v3380_v17 = vld [vmem:[#allocation4 + $0x1e0] sm:$0xff] }
 0x497   :  { %3771 = vst [vmem:[#allocation47_spill] sm:$0xff] %v3340_v9  ;;  %2618 = vmatprep.mubr.f32.mxu1 %v3340_v9  ;;  %v3358_v53 = vadd.f32 %v2567_v51, %v858_v60  ;;  %3782 = vst [vmem:[#allocation58_spill] sm:$0xff] %v3380_v17  ;;  %v863_v7 = vmul.f32 %v3037_v11, %v3380_v17 }
 0x498   :  { %v963_v52 = vpop.f32.mrf.mxu0  ;;  %2619 = vmatmul.mubr.f32.gmra.mxu1 %v3344_v33 }
 0x499   :  { %v3354_v55 = vadd.f32 %v963_v52, %v857_v59  ;;  %3777 = vst [vmem:[#allocation53_spill] sm:$0xff] %v3358_v53  ;;  %v3370_v59 = vld [vmem:[#allocation4 + $0x1d8] sm:$0xff] }
 0x49a   :  { %v2570_v56 = vpop.f32.mrf.mxu0  ;;  %3780 = vst [vmem:[#allocation56_spill] sm:$0xff] %v3370_v59  ;;  %v862_v4 = vmul.f32 %v3033_v8, %v3370_v59  ;;  %v3394_v59 = vld [vmem:[#allocation4 + $0x1f0] sm:$0xff] }
 0x49b   :  { %3775 = vst [vmem:[#allocation51_spill] sm:$0xff] %v3354_v55  ;;  %2621 = vmatprep.mubr.f32.mxu1 %v3354_v55  ;;  %v3372_v51 = vadd.f32 %v2570_v56, %v860_v0  ;;  %3786 = vst [vmem:[#allocation62_spill] sm:$0xff] %v3394_v59  ;;  %v865_v11 = vmul.f32 %v3043_v15, %v3394_v59  ;;  %v1056_v15 = vld [vmem:[#allocation2 + $0x278] sm:$0xff] }
 0x49c   :  { %v973_v13 = vpop.f32.mrf.mxu0  ;;  %2622 = vmatmul.mubr.f32.gmra.mxu1 %v3358_v53 }
 0x49d   :  { %v3368_v52 = vadd.f32 %v973_v13, %v859_v63  ;;  %3781 = vst [vmem:[#allocation57_spill] sm:$0xff] %v3372_v51  ;;  %v3384_v63 = vld [vmem:[#allocation4 + $0x1e8] sm:$0xff] }
 0x49e   :  { %v2573_v60 = vpop.f32.mrf.mxu0  ;;  %3784 = vst [vmem:[#allocation60_spill] sm:$0xff] %v3384_v63  ;;  %v864_v8 = vmul.f32 %v3039_v12, %v3384_v63 }
 0x49f   :  { %3779 = vst [vmem:[#allocation55_spill] sm:$0xff] %v3368_v52  ;;  %2624 = vmatprep.mubr.f32.mxu1 %v3368_v52  ;;  %v3386_v56 = vadd.f32 %v2573_v60, %v862_v4 }
 0x4a0   :  { %v983_v2 = vpop.f32.mrf.mxu0  ;;  %2625 = vmatmul.mubr.f32.gmra.mxu1 %v3372_v51 }
 0x4a1   :  { %v3382_v13 = vadd.f32 %v983_v2, %v861_v3  ;;  %3785 = vst [vmem:[#allocation61_spill] sm:$0xff] %v3386_v56  ;;  %v3398_v3 = vld [vmem:[#allocation4 + $0x1f8] sm:$0xff] }
 0x4a2   :  { %v2576_v0 = vpop.f32.mrf.mxu0  ;;  %3788 = vst [vmem:[#allocation64_spill] sm:$0xff] %v3398_v3  ;;  %v866_v12 = vmul.f32 %v3045_v16, %v3398_v3  ;;  %v1055_v16 = vld [vmem:[#allocation2 + $0x270] sm:$0xff] }
 0x4a3   :  { %3783 = vst [vmem:[#allocation59_spill] sm:$0xff] %v3382_v13  ;;  %2627 = vmatprep.mubr.f32.mxu1 %v3382_v13  ;;  %v3400_v60 = vadd.f32 %v2576_v0, %v864_v8  ;;  %v1059_v0 = vld [vmem:[#allocation2 + $0x290] sm:$0xff]  ;;  %v1057_v8 = vld [vmem:[#allocation2 + $0x280] sm:$0xff] }
 0x4a4   :  { %v993_v23 = vpop.f32.mrf.mxu0  ;;  %2628 = vmatmul.mubr.f32.gmra.mxu1 %v3386_v56  ;;  %2692 = vmatprep.subr.mxu1 %v1059_v0  ;;  %v1977_v56 = vld [vmem:[#allocation2 + $0x298] ss:$0 sm:$0xff] }
 0x4a5   :  { %v3396_v2 = vadd.f32 %v993_v23, %v863_v7  ;;  %3789 = vst [vmem:[#allocation65_spill] sm:$0xff] %v3400_v60  ;;  %v1058_v7 = vld [vmem:[#allocation2 + $0x288] sm:$0xff]  ;;  %2693 = vmatpush3.msra.mxu1 %v1059_v0 }
 0x4a6   :  { %v2579_v4 = vpop.f32.mrf.mxu0  ;;  %2694 = vmatprep.subr.mxu1 %v1058_v7  ;;  %v1050_v0 = vld [vmem:[#allocation2 + $0x248] sm:$0xff] }
 0x4a7   :  { %3787 = vst [vmem:[#allocation63_spill] sm:$0xff] %v3396_v2  ;;  %2630 = vmatprep.mubr.f32.mxu1 %v3396_v2  ;;  %v3410_v23 = vadd.f32 %v2579_v4, %v866_v12  ;;  %2695 = vmatpush3.msra.mxu1 %v1058_v7  ;;  %v1053_v4 = vld [vmem:[#allocation2 + $0x260] sm:$0xff]  ;;  %v1051_v12 = vld [vmem:[#allocation2 + $0x250] sm:$0xff] }
 0x4a8   :  { %v1003_v17 = vpop.f32.mrf.mxu0  ;;  %2631 = vmatmul.mubr.f32.gmra.mxu1 %v3400_v60  ;;  %2696 = vmatprep.subr.mxu1 %v1057_v8  ;;  %v1049_v7 = vld [vmem:[#allocation2 + $0x240] sm:$0xff] }
 0x4a9   :  { %v3408_v63 = vadd.f32 %v1003_v17, %v865_v11  ;;  %3791 = vst [vmem:[#allocation67_spill] sm:$0xff] %v3410_v23  ;;  %2697 = vmatpush3.msra.mxu1 %v1057_v8  ;;  %v1054_v17 = vld [vmem:[#allocation2 + $0x268] sm:$0xff]  ;;  %v1052_v11 = vld [vmem:[#allocation2 + $0x258] sm:$0xff] }
 0x4aa   :  { %2698 = vmatprep.subr.mxu1 %v1056_v15  ;;  %v1048_v8 = vld [vmem:[#allocation2 + $0x238] sm:$0xff] }
 0x4ab   :  { %3790 = vst [vmem:[#allocation66_spill] sm:$0xff] %v3408_v63  ;;  %2633 = vmatprep.mubr.f32.mxu1 %v3408_v63  ;;  %2699 = vmatpush3.msra.mxu1 %v1056_v15  ;;  %v1047_v15 = vld [vmem:[#allocation2 + $0x230] sm:$0xff] }
 0x4ac   :  { %2634 = vmatmul.mubr.f32.gmra.mxu1 %v3410_v23  ;;  %2700 = vmatprep.subr.mxu1 %v1055_v16 }
 0x4ad   :  { %2701 = vmatpush3.msra.mxu1 %v1055_v16 }
 0x4ae   :  { %2702 = vmatprep.subr.mxu1 %v1054_v17 }
 0x4af   :  { %2703 = vmatpush3.msra.mxu1 %v1054_v17 }
 0x4b0   :  { %2704 = vmatprep.subr.mxu1 %v1053_v4 }
 0x4b1   :  { %2705 = vmatpush3.msra.mxu1 %v1053_v4 }
 0x4b2   :  { %2706 = vmatprep.subr.mxu1 %v1052_v11 }
 0x4b3   :  { %2707 = vmatpush3.msra.mxu1 %v1052_v11 }
 0x4b4   :  { %2708 = vmatprep.subr.mxu1 %v1051_v12 }
 0x4b5   :  { %2709 = vmatpush3.msra.mxu1 %v1051_v12 }
 0x4b6   :  { %2710 = vmatprep.subr.mxu1 %v1050_v0 }
 0x4b7   :  { %2711 = vmatpush3.msra.mxu1 %v1050_v0 }
 0x4b8   :  { %2712 = vmatprep.subr.mxu1 %v1049_v7 }
 0x4b9   :  { %2713 = vmatpush3.msra.mxu1 %v1049_v7 }
 0x4ba   :  { %2714 = vmatprep.subr.mxu1 %v1048_v8 }
 0x4bb   :  { %2715 = vmatpush3.msra.mxu1 %v1048_v8 }
 0x4bc   :  { %2716 = vmatprep.subr.mxu1 %v1047_v15 }
 0x4bd   :  { %2717 = vmatpush3.msra.mxu1 %v1047_v15 }
 0x550   :  { %v3414_v16 = vpop.f32.mrf.mxu1 }
 0x552   :  { %v3416_v17 = vpop.f32.mrf.mxu1 }
 0x554   :  { %v2617_v4 = vpop.f32.mrf.mxu1 }
 0x556   :  { %v1142_v11 = vpop.f32.mrf.mxu1 }
 0x558   :  { %v2620_v63 = vpop.f32.mrf.mxu1 }
 0x55a   :  { %v1152_v59 = vpop.f32.mrf.mxu1 }
 0x55c   :  { %v2623_v12 = vpop.f32.mrf.mxu1 }
 0x55e   :  { %v1162_v23 = vpop.f32.mrf.mxu1 }
 0x560   :  { %v2626_v3 = vpop.f32.mrf.mxu1 }
 0x561   :  { %v1178_v1 = vadd.f32 %v2626_v3, %v1977_v56 }
 0x562   :  { %v1172_v0 = vpop.f32.mrf.mxu1 }
 0x564   :  { %v2629_v2 = vpop.f32.mrf.mxu1 }
 0x565   :  { %v1188_v61 = vadd.f32 %v2629_v2, %v1977_v56 }
 0x566   :  { %v1182_v60 = vpop.f32.mrf.mxu1 }
 0x567   :  { %v1183_v28 = vadd.f32 %v1977_v56, %v1182_v60  ;;  %v1222_v26 = vmax.f32 %v1188_v61, 0.0 }
 0x568   :  { %v2632_v7 = vpop.f32.mrf.mxu1 }
 0x569   :  { %v1198_v51 = vadd.f32 %v2632_v7, %v1977_v56  ;;  %v1221_v7 = vmax.f32 %v1183_v28, 0.0 }
 0x56a   :  { %v1192_v13 = vpop.f32.mrf.mxu1 }
 0x56b   :  { %v1193_v9 = vadd.f32 %v1977_v56, %v1192_v13  ;;  %v1224_v20 = vmax.f32 %v1198_v51, 0.0  ;;  %v1138_v13 = vadd.f32 %v3414_v16, %v1977_v56 }
 0x56c   :  { %v2635_v8 = vpop.f32.mrf.mxu1 }
 0x56d   :  { %v1208_v52 = vadd.f32 %v2635_v8, %v1977_v56  ;;  %v1223_v25 = vmax.f32 %v1193_v9, 0.0  ;;  %v1173_v8 = vadd.f32 %v1977_v56, %v1172_v0 }
 0x56e   :  { %v1202_v15 = vpop.f32.mrf.mxu1 }
 0x56f   :  { %v1226_v55 = vmax.f32 %v1208_v52, 0.0  ;;  %v1203_v53 = vadd.f32 %v1977_v56, %v1202_v15  ;;  %v1168_v52 = vadd.f32 %v2623_v12, %v1977_v56  ;;  %v1219_v51 = vmax.f32 %v1173_v8, 0.0  ;;  %v3800_v15 = vld [vmem:[#allocation12_spill] sm:$0xff]  ;;  %v3801_v8 = vld [vmem:[#allocation18_spill] sm:$0xff] }
 0x571   :  { %v1225_v33 = vmax.f32 %v1203_v53, 0.0  ;;  %2636 = vmatprep.subr.mxu0 %v1226_v55  ;;  %v1220_v53 = vmax.f32 %v1178_v1, 0.0  ;;  %v1218_v9 = vmax.f32 %v1168_v52, 0.0 }
 0x572   :  { %2637 = vmatpush3.msra.mxu0 %v1226_v55  ;;  %v1163_v55 = vadd.f32 %v1977_v56, %v1162_v23 }
 0x573   :  { %2638 = vmatprep.subr.mxu0 %v1225_v33 }
 0x574   :  { %2639 = vmatpush3.msra.mxu0 %v1225_v33  ;;  %v1158_v33 = vadd.f32 %v2620_v63, %v1977_v56  ;;  %v1217_v61 = vmax.f32 %v1163_v55, 0.0  ;;  %v1133_v63 = vadd.f32 %v1977_v56, %v3416_v17  ;;  %v3798_v17 = vld [vmem:[#allocation13_spill] sm:$0xff] }
 0x575   :  { %2640 = vmatprep.subr.mxu0 %v1224_v20  ;;  %v3802_v55 = vld [vmem:[#allocation17_spill] sm:$0xff] }
 0x576   :  { %2641 = vmatpush3.msra.mxu0 %v1224_v20  ;;  %v1153_v20 = vadd.f32 %v1977_v56, %v1152_v59  ;;  %v1216_v28 = vmax.f32 %v1158_v33, 0.0  ;;  %v1212_v59 = vmax.f32 %v1138_v13, 0.0  ;;  %v1211_v60 = vmax.f32 %v1133_v63, 0.0  ;;  %v3806_v13 = vld [vmem:[#allocation21_spill] sm:$0xff] }
 0x577   :  { %2642 = vmatprep.subr.mxu0 %v1223_v25 }
 0x578   :  { %2643 = vmatpush3.msra.mxu0 %v1223_v25  ;;  %v1148_v25 = vadd.f32 %v2617_v4, %v1977_v56  ;;  %v1215_v1 = vmax.f32 %v1153_v20, 0.0  ;;  %v3799_v4 = vld [vmem:[#allocation19_spill] sm:$0xff] }
 0x579   :  { %2644 = vmatprep.subr.mxu0 %v1222_v26 }
 0x57a   :  { %2645 = vmatpush3.msra.mxu0 %v1222_v26  ;;  %v1143_v26 = vadd.f32 %v1977_v56, %v1142_v11  ;;  %v1214_v2 = vmax.f32 %v1148_v25, 0.0  ;;  %v1232_v11 = vmul.f32 %v3799_v4, %v3798_v17  ;;  %v3805_v25 = vld [vmem:[#allocation22_spill] sm:$0xff] }
 0x57b   :  { %2646 = vmatprep.subr.mxu0 %v1221_v7 }
 0x57c   :  { %2647 = vmatpush3.msra.mxu0 %v1221_v7  ;;  %v1213_v3 = vmax.f32 %v1143_v26, 0.0  ;;  %v1231_v7 = vmul.f32 %v3801_v8, %v3800_v15 }
 0x57d   :  { %2648 = vmatprep.subr.mxu0 %v1220_v53 }
 0x57e   :  { %2649 = vmatpush3.msra.mxu0 %v1220_v53 }
 0x57f   :  { %2650 = vmatprep.subr.mxu0 %v1219_v51 }
 0x580   :  { %2651 = vmatpush3.msra.mxu0 %v1219_v51  ;;  %v3803_v51 = vld [vmem:[#allocation23_spill] sm:$0xff] }
 0x581   :  { %2652 = vmatprep.subr.mxu0 %v1218_v9  ;;  %v1234_v33 = vmul.f32 %v3803_v51, %v3802_v55 }
 0x582   :  { %2653 = vmatpush3.msra.mxu0 %v1218_v9 }
 0x583   :  { %2654 = vmatprep.subr.mxu0 %v1217_v61 }
 0x584   :  { %2655 = vmatpush3.msra.mxu0 %v1217_v61  ;;  %v3804_v61 = vld [vmem:[#allocation16_spill] sm:$0xff] }
 0x585   :  { %2656 = vmatprep.subr.mxu0 %v1216_v28 }
 0x586   :  { %2657 = vmatpush3.msra.mxu0 %v1216_v28  ;;  %v1233_v28 = vmul.f32 %v3805_v25, %v3804_v61  ;;  %v1759_v61 = vld [vmem:[#allocation2 + $0x310] sm:$0xff]  ;;  %v1758_v25 = vld [vmem:[#allocation2 + $0x308] sm:$0xff] }
 0x587   :  { %2658 = vmatprep.subr.mxu0 %v1215_v1 }
 0x588   :  { %2659 = vmatpush3.msra.mxu0 %v1215_v1 }
 0x589   :  { %2660 = vmatprep.subr.mxu0 %v1214_v2 }
 0x58a   :  { %2661 = vmatpush3.msra.mxu0 %v1214_v2  ;;  %v3807_v2 = vld [vmem:[#allocation27_spill] sm:$0xff] }
 0x58b   :  { %2662 = vmatprep.subr.mxu0 %v1213_v3  ;;  %v1236_v63 = vmul.f32 %v3807_v2, %v3806_v13  ;;  %v1754_v13 = vld [vmem:[#allocation2 + $0x2e8] sm:$0xff]  ;;  %v1753_v2 = vld [vmem:[#allocation2 + $0x2e0] sm:$0xff] }
 0x58c   :  { %2663 = vmatpush3.msra.mxu0 %v1213_v3 }
 0x58d   :  { %2664 = vmatprep.subr.mxu0 %v1212_v59 }
 0x58e   :  { %2665 = vmatpush3.msra.mxu0 %v1212_v59 }
 0x58f   :  { %2666 = vmatprep.subr.mxu0 %v1211_v60 }
 0x590   :  { %2667 = vmatpush3.msra.mxu0 %v1211_v60  ;;  %v3808_v60 = vld [vmem:[#allocation20_spill] sm:$0xff] }
 0x591   :  { %2669 = vmatmul.mubr.f32.vlgmr.msra.gmra.mxu0 %v3058_v34  ;;  %v1046_v34 = vld [vmem:[#allocation2 + $0x228] sm:$0xff] }
 0x592   :  { %2671 = vmatprep.mubr.f32.mxu0 %v3060_v36  ;;  %2718 = vmatprep.subr.mxu1 %v1046_v34  ;;  %v1045_v36 = vld [vmem:[#allocation2 + $0x220] sm:$0xff] }
 0x593   :  { %2719 = vmatpush3.msra.mxu1 %v1046_v34  ;;  %v3809_v34 = vld [vmem:[#allocation26_spill] sm:$0xff] }
 0x594   :  { %2720 = vmatprep.subr.mxu1 %v1045_v36 }
 0x595   :  { %2672 = vmatmul.mubr.f32.gmra.mxu0 %v3064_v31  ;;  %2721 = vmatpush3.msra.mxu1 %v1045_v36  ;;  %v1044_v31 = vld [vmem:[#allocation2 + $0x218] sm:$0xff]  ;;  %v1235_v36 = vmul.f32 %v3809_v34, %v3808_v60  ;;  %v1749_v60 = vld [vmem:[#allocation2 + $0x2c0] sm:$0xff] }
 0x596   :  { %2674 = vmatprep.mubr.f32.mxu0 %v3066_v32  ;;  %2722 = vmatprep.subr.mxu1 %v1044_v31  ;;  %v1228_v32 = vmul.f32 %v3128_v18, %v3108_v57  ;;  %v3796_v18 = vld [vmem:[#allocation9_spill] sm:$0xff] }
 0x597   :  { %2723 = vmatpush3.msra.mxu1 %v1044_v31 }
 0x599   :  { %2675 = vmatmul.mubr.f32.gmra.mxu0 %v3070_v37 }
 0x59a   :  { %2677 = vmatprep.mubr.f32.mxu0 %v3072_v38 }
 0x59d   :  { %2678 = vmatmul.mubr.f32.gmra.mxu0 %v3076_v39  ;;  %v3792_v39 = vld [vmem:[#allocation8_spill] sm:$0xff] }
 0x59e   :  { %2680 = vmatprep.mubr.f32.mxu0 %v3078_v40  ;;  %v3793_v40 = vld [vmem:[#allocation11_spill] sm:$0xff] }
 0x5a1   :  { %2681 = vmatmul.mubr.f32.gmra.mxu0 %v3082_v41  ;;  %v1227_v41 = vmul.f32 %v3793_v40, %v3792_v39 }
 0x5a2   :  { %2683 = vmatprep.mubr.f32.mxu0 %v3084_v42 }
 0x5a5   :  { %2684 = vmatmul.mubr.f32.gmra.mxu0 %v3088_v43 }
 0x5a6   :  { %2686 = vmatprep.mubr.f32.mxu0 %v3090_v44  ;;  %v3794_v44 = vld [vmem:[#allocation10_spill] sm:$0xff] }
 0x5a9   :  { %2687 = vmatmul.mubr.f32.gmra.mxu0 %v3094_v45  ;;  %v3795_v45 = vld [vmem:[#allocation15_spill] sm:$0xff] }
 0x5aa   :  { %2689 = vmatprep.mubr.f32.mxu0 %v3096_v46  ;;  %v1230_v46 = vmul.f32 %v3795_v45, %v3794_v44 }
 0x5ad   :  { %2690 = vmatmul.mubr.f32.gmra.mxu0 %v3100_v47 }
 0x5ae   :  { %2780 = vmatprep.mubr.f32.mxu0 %v3247_v27  ;;  %v3797_v27 = vld [vmem:[#allocation14_spill] sm:$0xff] }
 0x5af   :  { %v1229_v56 = vmul.f32 %v3797_v27, %v3796_v18 }
 0x651   :  { %v2670_v37 = vpop.f32.mrf.mxu0 }
 0x652   :  { %v1389_v38 = vadd.f32 %v2670_v37, %v1228_v32  ;;  %v3810_v37 = vld [vmem:[#allocation25_spill] sm:$0xff] }
 0x653   :  { %v1309_v42 = vpop.f32.mrf.mxu0 }
 0x654   :  { %1780 = vst [vmem:[%s3670_s5 + $0x8] sm:$0xff] %v1389_v38  ;;  %v1388_v43 = vadd.f32 %v1309_v42, %v1227_v41  ;;  %v3812_v42 = vld [vmem:[#allocation24_spill] sm:$0xff] }
 0x655   :  { %v2673_v47 = vpop.f32.mrf.mxu0 }
 0x656   :  { %1779 = vst [vmem:[%s3670_s5] sm:$0xff] %v1388_v43  ;;  %v1391_v57 = vadd.f32 %v2673_v47, %v1230_v46  ;;  %2724 = vmatprep.mubr.f32.mxu1 %v1388_v43  ;;  %v3813_v43 = vld [vmem:[#allocation30_spill] sm:$0xff]  ;;  %v3814_v47 = vld [vmem:[#allocation29_spill] sm:$0xff] }
 0x657   :  { %v1319_v23 = vpop.f32.mrf.mxu0  ;;  %2725 = vmatmul.mubr.f32.vlgmr.msra.gmra.mxu1 %v1389_v38  ;;  %v3811_v38 = vld [vmem:[#allocation31_spill] sm:$0xff]  ;;  %v1237_v44 = vmul.f32 %v3813_v43, %v3812_v42 }
 0x658   :  { %1782 = vst [vmem:[%s3670_s5 + $0x18] sm:$0xff] %v1391_v57  ;;  %v1390_v16 = vadd.f32 %v1319_v23, %v1229_v56  ;;  %v1238_v39 = vmul.f32 %v3811_v38, %v3810_v37  ;;  %v3816_v23 = vld [vmem:[#allocation28_spill] sm:$0xff] }
 0x659   :  { %v2676_v12 = vpop.f32.mrf.mxu0 }
 0x65a   :  { %1781 = vst [vmem:[%s3670_s5 + $0x10] sm:$0xff] %v1390_v16  ;;  %v1393_v0 = vadd.f32 %v2676_v12, %v1232_v11  ;;  %2727 = vmatprep.mubr.f32.mxu1 %v1390_v16  ;;  %v3817_v16 = vld [vmem:[#allocation34_spill] sm:$0xff]  ;;  %v3818_v12 = vld [vmem:[#allocation33_spill] sm:$0xff] }
 0x65b   :  { %v1329_v52 = vpop.f32.mrf.mxu0  ;;  %2728 = vmatmul.mubr.f32.gmra.mxu1 %v1391_v57  ;;  %v3815_v57 = vld [vmem:[#allocation35_spill] sm:$0xff]  ;;  %v1239_v17 = vmul.f32 %v3817_v16, %v3816_v23 }
 0x65c   :  { %1784 = vst [vmem:[%s3670_s5 + $0x28] sm:$0xff] %v1393_v0  ;;  %v1392_v53 = vadd.f32 %v1329_v52, %v1231_v7  ;;  %v1240_v18 = vmul.f32 %v3815_v57, %v3814_v47  ;;  %v3820_v52 = vld [vmem:[#allocation32_spill] sm:$0xff]  ;;  %v1978_v47 = vld [vmem:[#allocation2 + $0x2a0] ss:$0 sm:$0xff] }
 0x65d   :  { %v2679_v9 = vpop.f32.mrf.mxu0 }
 0x65e   :  { %1783 = vst [vmem:[%s3670_s5 + $0x20] sm:$0xff] %v1392_v53  ;;  %v1395_v20 = vadd.f32 %v2679_v9, %v1234_v33  ;;  %2730 = vmatprep.mubr.f32.mxu1 %v1392_v53  ;;  %v3821_v53 = vld [vmem:[#allocation36_spill] sm:$0xff]  ;;  %v1761_v9 = vld [vmem:[#allocation2 + $0x320] sm:$0xff] }
 0x65f   :  { %v1339_v26 = vpop.f32.mrf.mxu0  ;;  %2731 = vmatmul.mubr.f32.gmra.mxu1 %v1393_v0  ;;  %v3819_v0 = vld [vmem:[#allocation37_spill] sm:$0xff]  ;;  %v1241_v55 = vmul.f32 %v3821_v53, %v3820_v52  ;;  %2804 = vmatprep.subr.mxu1 %v1761_v9 }
 0x660   :  { %1786 = vst [vmem:[%s3670_s5 + $0x38] sm:$0xff] %v1395_v20  ;;  %v1394_v1 = vadd.f32 %v1339_v26, %v1233_v28  ;;  %v1242_v15 = vmul.f32 %v3819_v0, %v3818_v12  ;;  %2805 = vmatpush3.msra.mxu1 %v1761_v9  ;;  %v1757_v28 = vld [vmem:[#allocation2 + $0x300] sm:$0xff]  ;;  %v1756_v26 = vld [vmem:[#allocation2 + $0x2f8] sm:$0xff] }
 0x661   :  { %v2682_v3 = vpop.f32.mrf.mxu0 }
 0x662   :  { %1785 = vst [vmem:[%s3670_s5 + $0x30] sm:$0xff] %v1394_v1  ;;  %v1397_v59 = vadd.f32 %v2682_v3, %v1236_v63  ;;  %2733 = vmatprep.mubr.f32.mxu1 %v1394_v1  ;;  %v1755_v1 = vld [vmem:[#allocation2 + $0x2f0] sm:$0xff]  ;;  %v1752_v63 = vld [vmem:[#allocation2 + $0x2d8] sm:$0xff] }
 0x663   :  { %v1349_v31 = vpop.f32.mrf.mxu0  ;;  %2734 = vmatmul.mubr.f32.gmra.mxu1 %v1395_v20  ;;  %v1760_v20 = vld [vmem:[#allocation2 + $0x318] sm:$0xff]  ;;  %v1751_v3 = vld [vmem:[#allocation2 + $0x2d0] sm:$0xff] }
 0x664   :  { %1788 = vst [vmem:[%s3670_s5 + $0x48] sm:$0xff] %v1397_v59  ;;  %v1396_v32 = vadd.f32 %v1349_v31, %v1235_v36  ;;  %2806 = vmatprep.subr.mxu1 %v1760_v20 }
 0x665   :  { %v2685_v40 = vpop.f32.mrf.mxu0  ;;  %2807 = vmatpush3.msra.mxu1 %v1760_v20 }
 0x666   :  { %1787 = vst [vmem:[%s3670_s5 + $0x40] sm:$0xff] %v1396_v32  ;;  %v1399_v41 = vadd.f32 %v2685_v40, %v1238_v39  ;;  %2736 = vmatprep.mubr.f32.mxu1 %v1396_v32  ;;  %2808 = vmatprep.subr.mxu1 %v1759_v61 }
 0x667   :  { %v1359_v45 = vpop.f32.mrf.mxu0  ;;  %2737 = vmatmul.mubr.f32.gmra.mxu1 %v1397_v59  ;;  %v1750_v59 = vld [vmem:[#allocation2 + $0x2c8] sm:$0xff] }
 0x668   :  { %1790 = vst [vmem:[%s3670_s5 + $0x58] sm:$0xff] %v1399_v41  ;;  %v1398_v46 = vadd.f32 %v1359_v45, %v1237_v44  ;;  %2809 = vmatpush3.msra.mxu1 %v1759_v61 }
 0x669   :  { %v2688_v27 = vpop.f32.mrf.mxu0  ;;  %2810 = vmatprep.subr.mxu1 %v1758_v25 }
 0x66a   :  { %1789 = vst [vmem:[%s3670_s5 + $0x50] sm:$0xff] %v1398_v46  ;;  %v1401_v56 = vadd.f32 %v2688_v27, %v1240_v18  ;;  %2739 = vmatprep.mubr.f32.mxu1 %v1398_v46  ;;  %2811 = vmatpush3.msra.mxu1 %v1758_v25 }
 0x66b   :  { %v1369_v4 = vpop.f32.mrf.mxu0  ;;  %2740 = vmatmul.mubr.f32.gmra.mxu1 %v1399_v41  ;;  %2812 = vmatprep.subr.mxu1 %v1757_v28 }
 0x66c   :  { %1792 = vst [vmem:[%s3670_s5 + $0x68] sm:$0xff] %v1401_v56  ;;  %v1400_v11 = vadd.f32 %v1369_v4, %v1239_v17  ;;  %2813 = vmatpush3.msra.mxu1 %v1757_v28 }
 0x66d   :  { %v2691_v8 = vpop.f32.mrf.mxu0  ;;  %2814 = vmatprep.subr.mxu1 %v1756_v26 }
 0x66e   :  { %1791 = vst [vmem:[%s3670_s5 + $0x60] sm:$0xff] %v1400_v11  ;;  %v1403_v7 = vadd.f32 %v2691_v8, %v1242_v15  ;;  %2742 = vmatprep.mubr.f32.mxu1 %v1400_v11  ;;  %2815 = vmatpush3.msra.mxu1 %v1756_v26 }
 0x66f   :  { %v1379_v51 = vpop.f32.mrf.mxu0  ;;  %2743 = vmatmul.mubr.f32.gmra.mxu1 %v1401_v56  ;;  %2816 = vmatprep.subr.mxu1 %v1755_v1 }
 0x670   :  { %1794 = vst [vmem:[%s3670_s5 + $0x78] sm:$0xff] %v1403_v7  ;;  %v1402_v33 = vadd.f32 %v1379_v51, %v1241_v55  ;;  %2817 = vmatpush3.msra.mxu1 %v1755_v1 }
 0x671   :  { %2818 = vmatprep.subr.mxu1 %v1754_v13 }
 0x672   :  { %1793 = vst [vmem:[%s3670_s5 + $0x70] sm:$0xff] %v1402_v33  ;;  %2745 = vmatprep.mubr.f32.mxu1 %v1402_v33  ;;  %2819 = vmatpush3.msra.mxu1 %v1754_v13 }
 0x673   :  { %2746 = vmatmul.mubr.f32.gmra.mxu1 %v1403_v7  ;;  %2820 = vmatprep.subr.mxu1 %v1753_v2 }
 0x674   :  { %2821 = vmatpush3.msra.mxu1 %v1753_v2 }
 0x675   :  { %2822 = vmatprep.subr.mxu1 %v1752_v63 }
 0x676   :  { %2823 = vmatpush3.msra.mxu1 %v1752_v63 }
 0x677   :  { %2824 = vmatprep.subr.mxu1 %v1751_v3 }
 0x678   :  { %2825 = vmatpush3.msra.mxu1 %v1751_v3 }
 0x679   :  { %2826 = vmatprep.subr.mxu1 %v1750_v59 }
 0x67a   :  { %2827 = vmatpush3.msra.mxu1 %v1750_v59 }
 0x67b   :  { %2828 = vmatprep.subr.mxu1 %v1749_v60 }
 0x67c   :  { %2829 = vmatpush3.msra.mxu1 %v1749_v60 }
 0x717   :  { %v3516_v34 = vpop.f32.mrf.mxu1 }
 0x718   :  { %v1480_v63 = vadd.f32 %v3516_v34, %v1978_v47  ;;  %v3827_v34 = vld [vmem:[#allocation43_spill] sm:$0xff] }
 0x719   :  { %v3518_v36 = vpop.f32.mrf.mxu1 }
 0x71a   :  { %v1475_v59 = vadd.f32 %v1978_v47, %v3518_v36 }
 0x71b   :  { %v2729_v31 = vpop.f32.mrf.mxu1 }
 0x71c   :  { %v1490_v26 = vadd.f32 %v2729_v31, %v1978_v47  ;;  %v1553_v31 = vmax.f32 %v1475_v59, 0.0 }
 0x71d   :  { %v1484_v32 = vpop.f32.mrf.mxu1 }
 0x71e   :  { %v1485_v13 = vadd.f32 %v1978_v47, %v1484_v32  ;;  %v1556_v3 = vmax.f32 %v1490_v26, 0.0 }
 0x71f   :  { %v2732_v37 = vpop.f32.mrf.mxu1 }
 0x720   :  { %v1500_v20 = vadd.f32 %v2732_v37, %v1978_v47  ;;  %v1555_v60 = vmax.f32 %v1485_v13, 0.0  ;;  %v1554_v37 = vmax.f32 %v1480_v63, 0.0  ;;  %v3842_v13 = vld [vmem:[#allocation54_spill] sm:$0xff] }
 0x721   :  { %v1494_v38 = vpop.f32.mrf.mxu1 }
 0x722   :  { %v1495_v25 = vadd.f32 %v1978_v47, %v1494_v38  ;;  %v1558_v1 = vmax.f32 %v1500_v20, 0.0 }
 0x723   :  { %v2735_v39 = vpop.f32.mrf.mxu1 }
 0x724   :  { %v1510_v55 = vadd.f32 %v2735_v39, %v1978_v47  ;;  %v1557_v2 = vmax.f32 %v1495_v25, 0.0  ;;  %v3828_v39 = vld [vmem:[#allocation44_spill] sm:$0xff]  ;;  %v3841_v25 = vld [vmem:[#allocation61_spill] sm:$0xff] }
 0x725   :  { %v1504_v40 = vpop.f32.mrf.mxu1 }
 0x726   :  { %v1505_v33 = vadd.f32 %v1978_v47, %v1504_v40  ;;  %v1560_v61 = vmax.f32 %v1510_v55, 0.0  ;;  %v3829_v40 = vld [vmem:[#allocation49_spill] sm:$0xff]  ;;  %v3838_v55 = vld [vmem:[#allocation50_spill] sm:$0xff] }
 0x727   :  { %v2738_v41 = vpop.f32.mrf.mxu1 }
 0x728   :  { %v1520_v8 = vadd.f32 %v2738_v41, %v1978_v47  ;;  %v1559_v28 = vmax.f32 %v1505_v33, 0.0  ;;  %v1574_v41 = vmul.f32 %v3829_v40, %v3828_v39 }
 0x729   :  { %v1514_v42 = vpop.f32.mrf.mxu1 }
 0x72a   :  { %v1515_v52 = vadd.f32 %v1978_v47, %v1514_v42  ;;  %v1562_v51 = vmax.f32 %v1520_v8, 0.0  ;;  %v3837_v8 = vld [vmem:[#allocation57_spill] sm:$0xff] }
 0x72b   :  { %v2741_v43 = vpop.f32.mrf.mxu1 }
 0x72c   :  { %v1530_v11 = vadd.f32 %v2741_v43, %v1978_v47  ;;  %v1561_v9 = vmax.f32 %v1515_v52, 0.0 }
 0x72d   :  { %v1524_v44 = vpop.f32.mrf.mxu1 }
 0x72e   :  { %v1525_v0 = vadd.f32 %v1978_v47, %v1524_v44  ;;  %v1564_v7 = vmax.f32 %v1530_v11, 0.0  ;;  %v3830_v44 = vld [vmem:[#allocation42_spill] sm:$0xff] }
 0x72f   :  { %v2744_v45 = vpop.f32.mrf.mxu1 }
 0x730   :  { %v1540_v56 = vadd.f32 %v2744_v45, %v1978_v47  ;;  %v1563_v53 = vmax.f32 %v1525_v0, 0.0  ;;  %v3831_v45 = vld [vmem:[#allocation47_spill] sm:$0xff] }
 0x731   :  { %v1534_v46 = vpop.f32.mrf.mxu1 }
 0x732   :  { %v1535_v17 = vadd.f32 %v1978_v47, %v1534_v46  ;;  %v1566_v12 = vmax.f32 %v1540_v56, 0.0  ;;  %v1573_v46 = vmul.f32 %v3831_v45, %v3830_v44 }
 0x733   :  { %v2747_v57 = vpop.f32.mrf.mxu1 }
 0x734   :  { %v1550_v18 = vadd.f32 %v2747_v57, %v1978_v47  ;;  %v1565_v15 = vmax.f32 %v1535_v17, 0.0  ;;  %v3834_v17 = vld [vmem:[#allocation46_spill] sm:$0xff] }
 0x735   :  { %v1544_v27 = vpop.f32.mrf.mxu1 }
 0x736   :  { %v1568_v23 = vmax.f32 %v1550_v18, 0.0  ;;  %v1545_v16 = vadd.f32 %v1978_v47, %v1544_v27  ;;  %v3832_v18 = vld [vmem:[#allocation48_spill] sm:$0xff]  ;;  %v3833_v27 = vld [vmem:[#allocation53_spill] sm:$0xff] }
 0x737   :  { %v1576_v56 = vmul.f32 %v3833_v27, %v3832_v18 }
 0x738   :  { %v1567_v4 = vmax.f32 %v1545_v16, 0.0  ;;  %2748 = vmatprep.subr.mxu0 %v1568_v23 }
 0x739   :  { %2749 = vmatpush3.msra.mxu0 %v1568_v23 }
 0x73a   :  { %2750 = vmatprep.subr.mxu0 %v1567_v4 }
 0x73b   :  { %2751 = vmatpush3.msra.mxu0 %v1567_v4  ;;  %v3835_v4 = vld [vmem:[#allocation51_spill] sm:$0xff] }
 0x73c   :  { %2752 = vmatprep.subr.mxu0 %v1566_v12  ;;  %v1575_v11 = vmul.f32 %v3835_v4, %v3834_v17 }
 0x73d   :  { %2753 = vmatpush3.msra.mxu0 %v1566_v12 }
 0x73e   :  { %2754 = vmatprep.subr.mxu0 %v1565_v15 }
 0x73f   :  { %2755 = vmatpush3.msra.mxu0 %v1565_v15  ;;  %v3836_v15 = vld [vmem:[#allocation52_spill] sm:$0xff] }
 0x740   :  { %2756 = vmatprep.subr.mxu0 %v1564_v7 }
 0x741   :  { %2757 = vmatpush3.msra.mxu0 %v1564_v7  ;;  %v1578_v7 = vmul.f32 %v3837_v8, %v3836_v15 }
 0x742   :  { %2758 = vmatprep.subr.mxu0 %v1563_v53 }
 0x743   :  { %2759 = vmatpush3.msra.mxu0 %v1563_v53 }
 0x744   :  { %2760 = vmatprep.subr.mxu0 %v1562_v51 }
 0x745   :  { %2761 = vmatpush3.msra.mxu0 %v1562_v51  ;;  %v3839_v51 = vld [vmem:[#allocation55_spill] sm:$0xff] }
 0x746   :  { %2762 = vmatprep.subr.mxu0 %v1561_v9  ;;  %v1577_v33 = vmul.f32 %v3839_v51, %v3838_v55 }
 0x747   :  { %2763 = vmatpush3.msra.mxu0 %v1561_v9 }
 0x748   :  { %2764 = vmatprep.subr.mxu0 %v1560_v61 }
 0x749   :  { %2765 = vmatpush3.msra.mxu0 %v1560_v61  ;;  %v3840_v61 = vld [vmem:[#allocation56_spill] sm:$0xff] }
 0x74a   :  { %2766 = vmatprep.subr.mxu0 %v1559_v28 }
 0x74b   :  { %2767 = vmatpush3.msra.mxu0 %v1559_v28  ;;  %v1580_v28 = vmul.f32 %v3841_v25, %v3840_v61 }
 0x74c   :  { %2768 = vmatprep.subr.mxu0 %v1558_v1 }
 0x74d   :  { %2769 = vmatpush3.msra.mxu0 %v1558_v1 }
 0x74e   :  { %2770 = vmatprep.subr.mxu0 %v1557_v2 }
 0x74f   :  { %2771 = vmatpush3.msra.mxu0 %v1557_v2  ;;  %v3843_v2 = vld [vmem:[#allocation59_spill] sm:$0xff] }
 0x750   :  { %2772 = vmatprep.subr.mxu0 %v1556_v3  ;;  %v1579_v63 = vmul.f32 %v3843_v2, %v3842_v13 }
 0x751   :  { %2773 = vmatpush3.msra.mxu0 %v1556_v3 }
 0x752   :  { %2774 = vmatprep.subr.mxu0 %v1555_v60 }
 0x753   :  { %2775 = vmatpush3.msra.mxu0 %v1555_v60  ;;  %v3844_v60 = vld [vmem:[#allocation60_spill] sm:$0xff] }
 0x754   :  { %2776 = vmatprep.subr.mxu0 %v1554_v37 }
 0x755   :  { %2777 = vmatpush3.msra.mxu0 %v1554_v37  ;;  %v3845_v37 = vld [vmem:[#allocation65_spill] sm:$0xff] }
 0x756   :  { %2778 = vmatprep.subr.mxu0 %v1553_v31 }
 0x757   :  { %2779 = vmatpush3.msra.mxu0 %v1553_v31  ;;  %v1582_v31 = vmul.f32 %v3845_v37, %v3844_v60 }
 0x758   :  { %2781 = vmatmul.mubr.f32.vlgmr.msra.gmra.mxu0 %v3256_v22  ;;  %v1748_v22 = vld [vmem:[#allocation2 + $0x2b8] sm:$0xff] }
 0x759   :  { %2783 = vmatprep.mubr.f32.mxu0 %v3258_v5  ;;  %2830 = vmatprep.subr.mxu1 %v1748_v22  ;;  %v1747_v5 = vld [vmem:[#allocation2 + $0x2b0] sm:$0xff] }
 0x75a   :  { %2831 = vmatpush3.msra.mxu1 %v1748_v22 }
 0x75b   :  { %2832 = vmatprep.subr.mxu1 %v1747_v5 }
 0x75c   :  { %2784 = vmatmul.mubr.f32.gmra.mxu0 %v3262_v35  ;;  %2833 = vmatpush3.msra.mxu1 %v1747_v5  ;;  %v1746_v35 = vld [vmem:[#allocation2 + $0x2a8] sm:$0xff] }
 0x75d   :  { %2786 = vmatprep.mubr.f32.mxu0 %v3264_v10  ;;  %2834 = vmatprep.subr.mxu1 %v1746_v35  ;;  %v1570_v10 = vmul.f32 %v3316_v49, %v3304_v6  ;;  %v3826_v49 = vld [vmem:[#allocation39_spill] sm:$0xff] }
 0x75e   :  { %2835 = vmatpush3.msra.mxu1 %v1746_v35  ;;  %v1571_v36 = vmul.f32 %v3827_v34, %v3826_v49  ;;  %v3846_v35 = vld [vmem:[#allocation58_spill] sm:$0xff]  ;;  %v1979_v34 = vld [vmem:[#allocation2 + $0x328] ss:$0 sm:$0xff] }
 0x760   :  { %2787 = vmatmul.mubr.f32.gmra.mxu0 %v3268_v19 }
 0x761   :  { %2789 = vmatprep.mubr.f32.mxu0 %v3270_v14 }
 0x764   :  { %2790 = vmatmul.mubr.f32.gmra.mxu0 %v3274_v30  ;;  %v3822_v30 = vld [vmem:[#allocation38_spill] sm:$0xff] }
 0x765   :  { %2792 = vmatprep.mubr.f32.mxu0 %v3276_v29  ;;  %v3823_v29 = vld [vmem:[#allocation40_spill] sm:$0xff] }
 0x768   :  { %2793 = vmatmul.mubr.f32.gmra.mxu0 %v3280_v62  ;;  %v1569_v62 = vmul.f32 %v3823_v29, %v3822_v30  ;;  %v3848_v29 = vld [vmem:[#allocation64_spill] sm:$0xff] }
 0x769   :  { %2795 = vmatprep.mubr.f32.mxu0 %v3282_v50 }
 0x76c   :  { %2796 = vmatmul.mubr.f32.gmra.mxu0 %v3286_v58 }
 0x76d   :  { %2798 = vmatprep.mubr.f32.mxu0 %v3288_v24  ;;  %v3824_v24 = vld [vmem:[#allocation41_spill] sm:$0xff] }
 0x770   :  { %2799 = vmatmul.mubr.f32.gmra.mxu0 %v3292_v21  ;;  %v3825_v21 = vld [vmem:[#allocation45_spill] sm:$0xff] }
 0x771   :  { %2801 = vmatprep.mubr.f32.mxu0 %v3294_v54  ;;  %v1572_v54 = vmul.f32 %v3825_v21, %v3824_v24  ;;  %v3850_v21 = vld [vmem:[#allocation62_spill] sm:$0xff] }
 0x774   :  { %2802 = vmatmul.mubr.f32.gmra.mxu0 %v3298_v48 }
 0x818   :  { %v2782_v19 = vpop.f32.mrf.mxu0 }
 0x819   :  { %v1731_v14 = vadd.f32 %v2782_v19, %v1570_v10  ;;  %v3847_v10 = vld [vmem:[#allocation63_spill] sm:$0xff] }
 0x81a   :  { %v1651_v50 = vpop.f32.mrf.mxu0  ;;  %v1581_v19 = vmul.f32 %v3847_v10, %v3846_v35 }
 0x81b   :  { %1764 = vst [vmem:[%s3669_s4 + $0x8] sm:$0xff] %v1731_v14  ;;  %v1730_v58 = vadd.f32 %v1651_v50, %v1569_v62  ;;  %v3849_v62 = vld [vmem:[#allocation67_spill] sm:$0xff] }
 0x81c   :  { %v2785_v48 = vpop.f32.mrf.mxu0  ;;  %v1584_v50 = vmul.f32 %v3849_v62, %v3848_v29 }
 0x81d   :  { %1763 = vst [vmem:[%s3669_s4] sm:$0xff] %v1730_v58  ;;  %v1733_v6 = vadd.f32 %v2785_v48, %v1572_v54  ;;  %2836 = vmatprep.mubr.f32.mxu1 %v1730_v58  ;;  %v3851_v54 = vld [vmem:[#allocation66_spill] sm:$0xff] }
 0x81e   :  { %v1661_v32 = vpop.f32.mrf.mxu0  ;;  %2837 = vmatmul.mubr.f32.vlgmr.msra.gmra.mxu1 %v1731_v14  ;;  %v1583_v48 = vmul.f32 %v3851_v54, %v3850_v21 }
 0x81f   :  { %1766 = vst [vmem:[%s3669_s4 + $0x18] sm:$0xff] %v1733_v6  ;;  %v1732_v38 = vadd.f32 %v1661_v32, %v1571_v36 }
 0x820   :  { %v2788_v42 = vpop.f32.mrf.mxu0 }
 0x821   :  { %1765 = vst [vmem:[%s3669_s4 + $0x10] sm:$0xff] %v1732_v38  ;;  %v1735_v43 = vadd.f32 %v2788_v42, %v1574_v41  ;;  %2839 = vmatprep.mubr.f32.mxu1 %v1732_v38 }
 0x822   :  { %v1671_v47 = vpop.f32.mrf.mxu0  ;;  %2840 = vmatmul.mubr.f32.gmra.mxu1 %v1733_v6 }
 0x823   :  { %1768 = vst [vmem:[%s3669_s4 + $0x28] sm:$0xff] %v1735_v43  ;;  %v1734_v57 = vadd.f32 %v1671_v47, %v1573_v46 }
 0x824   :  { %v2791_v23 = vpop.f32.mrf.mxu0 }
 0x825   :  { %1767 = vst [vmem:[%s3669_s4 + $0x20] sm:$0xff] %v1734_v57  ;;  %v1737_v16 = vadd.f32 %v2791_v23, %v1576_v56  ;;  %2842 = vmatprep.mubr.f32.mxu1 %v1734_v57 }
 0x826   :  { %v1681_v12 = vpop.f32.mrf.mxu0  ;;  %2843 = vmatmul.mubr.f32.gmra.mxu1 %v1735_v43 }
 0x827   :  { %1770 = vst [vmem:[%s3669_s4 + $0x38] sm:$0xff] %v1737_v16  ;;  %v1736_v0 = vadd.f32 %v1681_v12, %v1575_v11 }
 0x828   :  { %v2794_v52 = vpop.f32.mrf.mxu0 }
 0x829   :  { %1769 = vst [vmem:[%s3669_s4 + $0x30] sm:$0xff] %v1736_v0  ;;  %v1739_v53 = vadd.f32 %v2794_v52, %v1578_v7  ;;  %2845 = vmatprep.mubr.f32.mxu1 %v1736_v0 }
 0x82a   :  { %v1691_v9 = vpop.f32.mrf.mxu0  ;;  %2846 = vmatmul.mubr.f32.gmra.mxu1 %v1737_v16 }
 0x82b   :  { %1772 = vst [vmem:[%s3669_s4 + $0x48] sm:$0xff] %v1739_v53  ;;  %v1738_v20 = vadd.f32 %v1691_v9, %v1577_v33 }
 0x82c   :  { %v2797_v26 = vpop.f32.mrf.mxu0 }
 0x82d   :  { %1771 = vst [vmem:[%s3669_s4 + $0x40] sm:$0xff] %v1738_v20  ;;  %v1741_v1 = vadd.f32 %v2797_v26, %v1580_v28  ;;  %2848 = vmatprep.mubr.f32.mxu1 %v1738_v20 }
 0x82e   :  { %v1701_v3 = vpop.f32.mrf.mxu0  ;;  %2849 = vmatmul.mubr.f32.gmra.mxu1 %v1739_v53 }
 0x82f   :  { %1774 = vst [vmem:[%s3669_s4 + $0x58] sm:$0xff] %v1741_v1  ;;  %v1740_v59 = vadd.f32 %v1701_v3, %v1579_v63 }
 0x830   :  { %v2800_v22 = vpop.f32.mrf.mxu0 }
 0x831   :  { %1773 = vst [vmem:[%s3669_s4 + $0x50] sm:$0xff] %v1740_v59  ;;  %v1743_v5 = vadd.f32 %v2800_v22, %v1582_v31  ;;  %2851 = vmatprep.mubr.f32.mxu1 %v1740_v59 }
 0x832   :  { %v1711_v14 = vpop.f32.mrf.mxu0  ;;  %2852 = vmatmul.mubr.f32.gmra.mxu1 %v1741_v1 }
 0x833   :  { %1776 = vst [vmem:[%s3669_s4 + $0x68] sm:$0xff] %v1743_v5  ;;  %v1742_v30 = vadd.f32 %v1711_v14, %v1581_v19 }
 0x834   :  { %v2803_v58 = vpop.f32.mrf.mxu0 }
 0x835   :  { %1775 = vst [vmem:[%s3669_s4 + $0x60] sm:$0xff] %v1742_v30  ;;  %v1745_v24 = vadd.f32 %v2803_v58, %v1584_v50  ;;  %2854 = vmatprep.mubr.f32.mxu1 %v1742_v30 }
 0x836   :  { %v1721_v6 = vpop.f32.mrf.mxu0  ;;  %2855 = vmatmul.mubr.f32.gmra.mxu1 %v1743_v5 }
 0x837   :  { %1778 = vst [vmem:[%s3669_s4 + $0x78] sm:$0xff] %v1745_v24  ;;  %v1744_v49 = vadd.f32 %v1721_v6, %v1583_v48 }
 0x839   :  { %1777 = vst [vmem:[%s3669_s4 + $0x70] sm:$0xff] %v1744_v49  ;;  %2857 = vmatprep.mubr.f32.mxu1 %v1744_v49 }
 0x83a   :  { %2858 = vmatmul.mubr.f32.gmra.mxu1 %v1745_v24 }
 0x8de   :  { %v2838_v36 = vpop.f32.mrf.mxu1 }
 0x8df   :  { %v1871_v32 = vadd.f32 %v2838_v36, %v1979_v34 }
 0x8e0   :  { %v1865_v38 = vpop.f32.mrf.mxu1 }
 0x8e1   :  { %1945 = vst [vmem:[%s3671_s6 + $0x8] sm:$0xff] %v1871_v32  ;;  %v1866_v39 = vadd.f32 %v1979_v34, %v1865_v38 }
 0x8e2   :  { %v2841_v40 = vpop.f32.mrf.mxu1 }
 0x8e3   :  { %1944 = vst [vmem:[%s3671_s6] sm:$0xff] %v1866_v39  ;;  %v1881_v41 = vadd.f32 %v2841_v40, %v1979_v34 }
 0x8e4   :  { %v1875_v42 = vpop.f32.mrf.mxu1 }
 0x8e5   :  { %1947 = vst [vmem:[%s3671_s6 + $0x18] sm:$0xff] %v1881_v41  ;;  %v1876_v43 = vadd.f32 %v1979_v34, %v1875_v42 }
 0x8e6   :  { %v2844_v44 = vpop.f32.mrf.mxu1 }
 0x8e7   :  { %1946 = vst [vmem:[%s3671_s6 + $0x10] sm:$0xff] %v1876_v43  ;;  %v1891_v45 = vadd.f32 %v2844_v44, %v1979_v34 }
 0x8e8   :  { %v1885_v46 = vpop.f32.mrf.mxu1 }
 0x8e9   :  { %1949 = vst [vmem:[%s3671_s6 + $0x28] sm:$0xff] %v1891_v45  ;;  %v1886_v47 = vadd.f32 %v1979_v34, %v1885_v46 }
 0x8ea   :  { %v2847_v57 = vpop.f32.mrf.mxu1 }
 0x8eb   :  { %1948 = vst [vmem:[%s3671_s6 + $0x20] sm:$0xff] %v1886_v47  ;;  %v1901_v18 = vadd.f32 %v2847_v57, %v1979_v34 }
 0x8ec   :  { %v1895_v27 = vpop.f32.mrf.mxu1 }
 0x8ed   :  { %1951 = vst [vmem:[%s3671_s6 + $0x38] sm:$0xff] %v1901_v18  ;;  %v1896_v56 = vadd.f32 %v1979_v34, %v1895_v27 }
 0x8ee   :  { %v2850_v23 = vpop.f32.mrf.mxu1 }
 0x8ef   :  { %1950 = vst [vmem:[%s3671_s6 + $0x30] sm:$0xff] %v1896_v56  ;;  %v1911_v16 = vadd.f32 %v2850_v23, %v1979_v34 }
 0x8f0   :  { %v1905_v17 = vpop.f32.mrf.mxu1 }
 0x8f1   :  { %1953 = vst [vmem:[%s3671_s6 + $0x48] sm:$0xff] %v1911_v16  ;;  %v1906_v4 = vadd.f32 %v1979_v34, %v1905_v17 }
 0x8f2   :  { %v2853_v11 = vpop.f32.mrf.mxu1 }
 0x8f3   :  { %1952 = vst [vmem:[%s3671_s6 + $0x40] sm:$0xff] %v1906_v4  ;;  %v1921_v12 = vadd.f32 %v2853_v11, %v1979_v34 }
 0x8f4   :  { %v1915_v0 = vpop.f32.mrf.mxu1 }
 0x8f5   :  { %1955 = vst [vmem:[%s3671_s6 + $0x58] sm:$0xff] %v1921_v12  ;;  %v1916_v15 = vadd.f32 %v1979_v34, %v1915_v0 }
 0x8f6   :  { %v2856_v8 = vpop.f32.mrf.mxu1 }
 0x8f7   :  { %1954 = vst [vmem:[%s3671_s6 + $0x50] sm:$0xff] %v1916_v15  ;;  %v1931_v7 = vadd.f32 %v2856_v8, %v1979_v34 }
 0x8f8   :  { %v1925_v52 = vpop.f32.mrf.mxu1 }
 0x8f9   :  { %1957 = vst [vmem:[%s3671_s6 + $0x68] sm:$0xff] %v1931_v7  ;;  %v1926_v53 = vadd.f32 %v1979_v34, %v1925_v52 }
 0x8fa   :  { %v2859_v55 = vpop.f32.mrf.mxu1 }
 0x8fb   :  { %1956 = vst [vmem:[%s3671_s6 + $0x60] sm:$0xff] %v1926_v53  ;;  %v1941_v51 = vadd.f32 %v2859_v55, %v1979_v34 }
 0x8fc   :  { %v1935_v33 = vpop.f32.mrf.mxu1 }
 0x8fd   :  { %1959 = vst [vmem:[%s3671_s6 + $0x78] sm:$0xff] %v1941_v51  ;;  %v1936_v9 = vadd.f32 %v1979_v34, %v1935_v33 }
 0x8ff   :  { %1958 = vst [vmem:[%s3671_s6 + $0x70] sm:$0xff] %v1936_v9 }
 0x900   :  { %1972 = vsyncpa [#allocation3], 1 }
 0x901   :  { %1973 = vsyncpa [#allocation5], 1 }

</bundles_post_ra>
